<compile_context>
chip_gen: v7x
topology: tpu7x:2x2x1
jax: 0.10.0
libtpu: 0.0.40
codegen_flags: <defaults>
</compile_context>

<pallas_src>
import math

import jax
import jax.numpy as jnp
from jax.experimental import pallas as pl
from jax.experimental.pallas import tpu as pltpu


def _make_kernel(heads: int):
    def kernel(coef_ref, xq_ref, xk_ref, o_ref):
        # xq: (1, L) with L = TB*F; lane c = t*F + i holds x[t, i] (query side).
        # xk: (F, L); row j, lane c = t*F + i holds x[t, j] (key side).
        xq = xq_ref[0]                                  # (1, L)
        xk = xk_ref[0]                                  # (F, L)
        xx = xq * xk                                    # shared across heads
        acc = jnp.zeros_like(xq)                        # (1, L)

        for h in range(heads):                          # static unroll (4 heads)
            a = coef_ref[0, h]
            b = coef_ref[1, h]
            c = coef_ref[2, h]
            e = coef_ref[3, h]
            u = coef_ref[4, h]
            # per-frame score matrix, keys on sublanes, (frame, query) on lanes
            s = a * xx + b * xq + c * xk + e            # (F, L)
            m = jnp.max(s, axis=0, keepdims=True)       # (1, L) stabilizer
            p = jnp.exp(s - m)                          # (F, L) unnormalized
            denom = jnp.sum(p, axis=0, keepdims=True)   # (1, L)
            px = jnp.sum(p * xk, axis=0, keepdims=True)  # (1, L)  = Σ_j p_ij x_j
            acc = acc + (u * px) * pl.reciprocal(denom, approx=True)

        out = acc + coef_ref[5, 0]                      # folded global bias
        o_ref[0] = xq * jax.nn.sigmoid(out)             # original x * mask

    return kernel


def _fold_params(params, heads):
    """Collapse all linear layers into per-head scalars (see module docstring)."""
    H = params["w_in"].shape[0]
    d = H // heads
    scale = 1.0 / math.sqrt(d)

    w_in = params["w_in"][:, 0]                         # (H,)
    b_in = params["b_in"]                               # (H,)
    Wq, Wk, Wv = jnp.split(params["in_proj_w"], 3, axis=0)   # (H, H) each
    bq, bk, bv = jnp.split(params["in_proj_b"], 3, axis=0)   # (H,) each

    aq = (Wq @ w_in).reshape(heads, d)
    bq_ = (Wq @ b_in + bq).reshape(heads, d)
    ak = (Wk @ w_in).reshape(heads, d)
    bk_ = (Wk @ b_in + bk).reshape(heads, d)
    av = (Wv @ w_in).reshape(heads, d)
    bv_ = (Wv @ b_in + bv).reshape(heads, d)

    a = jnp.sum(aq * ak, axis=-1) * scale               # (heads,)
    b = jnp.sum(aq * bk_, axis=-1) * scale
    c = jnp.sum(bq_ * ak, axis=-1) * scale
    e = jnp.sum(bq_ * bk_, axis=-1) * scale

    Wo = params["out_proj_w"]                           # (H, H)
    bo = params["out_proj_b"]                           # (H,)
    w_out = params["w_out"][0]                          # (H,)
    b_out = params["b_out"][0]                          # ()

    Wo_h = Wo.reshape(H, heads, d)
    gamma = jnp.einsum("Hhd,hd->hH", Wo_h, av)          # (heads, H)
    delta = jnp.einsum("Hhd,hd->H", Wo_h, bv_) + bo     # (H,)
    u = gamma @ w_out                                   # (heads,)
    bias_total = jnp.dot(w_out, delta) + b_out          # ()

    coef = jnp.zeros((6, heads), jnp.float32)
    coef = coef.at[0].set(a).at[1].set(b).at[2].set(c)
    coef = coef.at[3].set(e).at[4].set(u)
    coef = coef.at[5, 0].set(bias_total)
    return coef


def frequency_attention(x, params, *, heads, frames_per_block=None):
    """x: (batch_frames, 1, freq_bins) float32 -> same shape."""
    B, one, F = x.shape
    assert one == 1
    H = params["w_in"].shape[0]
    assert H % heads == 0

    coef = _fold_params(params, heads)                  # (6, heads) -> SMEM

    # ---- choose frames-per-block: big enough to amortize per-step overhead,
    # small enough to keep the grid splittable across TensorCores (v7x).
    if frames_per_block is None:
        TB = 256
        while TB > 8 and TB * 2 > B:
            TB //= 2
    else:
        TB = frames_per_block
    k = 128 // math.gcd(F, 128)                         # TB*F must be lane-dense
    TB = ((TB + k - 1) // k) * k
    Bp = ((B + TB - 1) // TB) * TB
    nb = Bp // TB
    L = TB * F

    # ---- layout plumbing (wrapper-side, lane-dense blocks)
    x2 = x[:, 0, :]                                     # (B, F)
    if Bp != B:
        x2 = jnp.pad(x2, ((0, Bp - B), (0, 0)))
    xb = x2.reshape(nb, TB, F)
    x_row = xb.reshape(nb, 1, L)                        # queries, lane-dense
    x_key = jnp.broadcast_to(                           # keys: [blk, j, t*F+i] = x[t, j]
        jnp.transpose(xb, (0, 2, 1))[:, :, :, None], (nb, F, TB, F)
    ).reshape(nb, F, L)

    flops = int(9 * heads * F * F) * Bp
    transcendentals = int(Bp * F * (heads * F + 2))
    bytes_accessed = int(4 * Bp * F * (F + 2))

    out = pl.pallas_call(
        _make_kernel(heads),
        out_shape=jax.ShapeDtypeStruct((nb, 1, L), jnp.float32),
        grid=(nb,),
        in_specs=[
            pl.BlockSpec(memory_space=pltpu.MemorySpace.SMEM),   # coef (6, heads)
            pl.BlockSpec((1, 1, L), lambda b: (b, 0, 0)),        # x_row
            pl.BlockSpec((1, F, L), lambda b: (b, 0, 0)),        # x_key
        ],
        out_specs=pl.BlockSpec((1, 1, L), lambda b: (b, 0, 0)),
        compiler_params=pltpu.CompilerParams(dimension_semantics=("parallel",)),
        cost_estimate=pl.CostEstimate(
            flops=flops, transcendentals=transcendentals, bytes_accessed=bytes_accessed
        ),
    )(coef, x_row, x_key)

    y = out.reshape(Bp, F)[:B]
    return y.reshape(B, 1, F)


def reference(x, params, *, heads):
    """Pure-JAX reference matching the PyTorch forward."""
    H = params["w_in"].shape[0]
    d = H // heads
    xt = jnp.transpose(x, (0, 2, 1))                    # (B, F, 1)
    xp = xt @ params["w_in"].T + params["b_in"]         # (B, F, H)
    wq, wk, wv = jnp.split(params["in_proj_w"], 3, axis=0)
    bq, bk, bv = jnp.split(params["in_proj_b"], 3, axis=0)
    q = xp @ wq.T + bq
    k = xp @ wk.T + bk
    v = xp @ wv.T + bv
    B, F, _ = q.shape
    qh = q.reshape(B, F, heads, d).transpose(0, 2, 1, 3)
    kh = k.reshape(B, F, heads, d).transpose(0, 2, 1, 3)
    vh = v.reshape(B, F, heads, d).transpose(0, 2, 1, 3)
    s = jnp.einsum("bhqd,bhkd->bhqk", qh, kh) / math.sqrt(d)
    a = jax.nn.softmax(s, axis=-1)
    oh = jnp.einsum("bhqk,bhkd->bhqd", a, vh)
    o = oh.transpose(0, 2, 1, 3).reshape(B, F, H)
    ao = o @ params["out_proj_w"].T + params["out_proj_b"]
    out = ao @ params["w_out"].T + params["b_out"]      # (B, F, 1)
    mask = jax.nn.sigmoid(out)
    return jnp.transpose(xt * mask, (0, 2, 1))          # (B, 1, F)


if __name__ == "__main__":
    F, H, heads = 16, 32, 4
    key = jax.random.PRNGKey(0)
    ks = jax.random.split(key, 9)
    params = dict(
        w_in=jax.random.normal(ks[0], (H, 1), jnp.float32) * 0.5,
        b_in=jax.random.normal(ks[1], (H,), jnp.float32) * 0.1,
        in_proj_w=jax.random.normal(ks[2], (3 * H, H), jnp.float32) / math.sqrt(H),
        in_proj_b=jax.random.normal(ks[3], (3 * H,), jnp.float32) * 0.1,
        out_proj_w=jax.random.normal(ks[4], (H, H), jnp.float32) / math.sqrt(H),
        out_proj_b=jax.random.normal(ks[5], (H,), jnp.float32) * 0.1,
        w_out=jax.random.normal(ks[6], (1, H), jnp.float32) / math.sqrt(H),
        b_out=jax.random.normal(ks[7], (1,), jnp.float32) * 0.1,
    )

    # Two cases: one exact multiple of the frame block, one exercising padding.
    for B in (64, 6):
        kx = jax.random.fold_in(ks[8], B)
        x = jax.random.normal(kx, (B, 1, F), jnp.float32)   # (batch_frames, 1, freq_bins)

        out = frequency_attention(x, params, heads=heads)
        jax.block_until_ready(out)

        ref = reference(x, params, heads=heads)
        assert out.shape == x.shape
        max_err = float(jnp.max(jnp.abs(out - ref)))
        assert jnp.allclose(out, ref, atol=2e-3, rtol=2e-3), f"B={B} max_err={max_err}"

    print("KERNEL_OK")
</pallas_src>

<mosaic_0001>
module attributes {stable_mosaic.version = 11 : i64} {
  func.func @kernel(%arg0: i32, %arg1: memref<6x4xf32, #tpu.memory_space<smem>>, %arg2: memref<1x1x512xf32, #tpu.memory_space<vmem>>, %arg3: memref<1x16x512xf32, #tpu.memory_space<vmem>>, %arg4: memref<1x1x512xf32, #tpu.memory_space<vmem>>) attributes {dimension_semantics = [#tpu.dimension_semantics<parallel>], iteration_bounds = array<i64: 2>, scalar_prefetch = 0 : i64, scratch_operands = 0 : i64, tpu.core_type = #tpu.core_type<tc>, window_params = [{transform_indices = @transform_0, window_bounds = array<i64: 6, 4>}, {transform_indices = @transform_1, window_bounds = array<i64: 1, 1, 512>}, {transform_indices = @transform_2, window_bounds = array<i64: 1, 16, 512>}, {transform_indices = @transform_3, window_bounds = array<i64: 1, 1, 512>}]} {
    %c0 = arith.constant 0 : index
    %c0_0 = arith.constant 0 : index
    %c0_1 = arith.constant 0 : index
    %0 = vector.load %arg2[%c0, %c0_0, %c0_1] : memref<1x1x512xf32, #tpu.memory_space<vmem>>, vector<1x1x512xf32>
    %1 = vector.shape_cast %0 : vector<1x1x512xf32> to vector<1x512xf32>
    %c0_2 = arith.constant 0 : index
    %c0_3 = arith.constant 0 : index
    %c0_4 = arith.constant 0 : index
    %2 = vector.load %arg3[%c0_2, %c0_3, %c0_4] : memref<1x16x512xf32, #tpu.memory_space<vmem>>, vector<1x16x512xf32>
    %3 = vector.shape_cast %2 : vector<1x16x512xf32> to vector<16x512xf32>
    %4 = vector.broadcast %1 : vector<1x512xf32> to vector<16x512xf32>
    %5 = arith.mulf %4, %3 : vector<16x512xf32>
    %cst = arith.constant 0.000000e+00 : f32
    %6 = vector.broadcast %cst : f32 to vector<1x512xf32>
    %c0_5 = arith.constant 0 : index
    %c0_6 = arith.constant 0 : index
    %7 = memref.load %arg1[%c0_5, %c0_6] : memref<6x4xf32, #tpu.memory_space<smem>>
    %c1 = arith.constant 1 : index
    %c0_7 = arith.constant 0 : index
    %8 = memref.load %arg1[%c1, %c0_7] : memref<6x4xf32, #tpu.memory_space<smem>>
    %c2 = arith.constant 2 : index
    %c0_8 = arith.constant 0 : index
    %9 = memref.load %arg1[%c2, %c0_8] : memref<6x4xf32, #tpu.memory_space<smem>>
    %c3 = arith.constant 3 : index
    %c0_9 = arith.constant 0 : index
    %10 = memref.load %arg1[%c3, %c0_9] : memref<6x4xf32, #tpu.memory_space<smem>>
    %c4 = arith.constant 4 : index
    %c0_10 = arith.constant 0 : index
    %11 = memref.load %arg1[%c4, %c0_10] : memref<6x4xf32, #tpu.memory_space<smem>>
    %12 = vector.broadcast %7 : f32 to vector<16x512xf32>
    %13 = arith.mulf %12, %5 : vector<16x512xf32>
    %14 = vector.broadcast %8 : f32 to vector<1x512xf32>
    %15 = arith.mulf %14, %1 : vector<1x512xf32>
    %16 = vector.broadcast %15 : vector<1x512xf32> to vector<16x512xf32>
    %17 = arith.addf %13, %16 : vector<16x512xf32>
    %18 = vector.broadcast %9 : f32 to vector<16x512xf32>
    %19 = arith.mulf %18, %3 : vector<16x512xf32>
    %20 = arith.addf %17, %19 : vector<16x512xf32>
    %21 = vector.broadcast %10 : f32 to vector<16x512xf32>
    %22 = arith.addf %20, %21 : vector<16x512xf32>
    %cst_11 = arith.constant dense<0xFF800000> : vector<512xf32>
    %23 = vector.multi_reduction <maximumf>, %22, %cst_11 [0] : vector<16x512xf32> to vector<512xf32>
    %24 = vector.shape_cast %23 : vector<512xf32> to vector<1x512xf32>
    %25 = vector.broadcast %24 : vector<1x512xf32> to vector<16x512xf32>
    %26 = arith.subf %22, %25 : vector<16x512xf32>
    %27 = math.exp %26 : vector<16x512xf32>
    %cst_12 = arith.constant dense<0.000000e+00> : vector<512xf32>
    %28 = vector.multi_reduction <add>, %27, %cst_12 [0] : vector<16x512xf32> to vector<512xf32>
    %29 = vector.shape_cast %28 : vector<512xf32> to vector<1x512xf32>
    %30 = arith.mulf %27, %3 : vector<16x512xf32>
    %cst_13 = arith.constant dense<0.000000e+00> : vector<512xf32>
    %31 = vector.multi_reduction <add>, %30, %cst_13 [0] : vector<16x512xf32> to vector<512xf32>
    %32 = vector.shape_cast %31 : vector<512xf32> to vector<1x512xf32>
    %33 = vector.broadcast %11 : f32 to vector<1x512xf32>
    %34 = arith.mulf %33, %32 : vector<1x512xf32>
    %35 = tpu.reciprocal %29 {approx = true} : vector<1x512xf32> -> vector<1x512xf32>
    %36 = arith.mulf %34, %35 : vector<1x512xf32>
    %37 = arith.addf %6, %36 : vector<1x512xf32>
    %c0_14 = arith.constant 0 : index
    %c1_15 = arith.constant 1 : index
    %38 = memref.load %arg1[%c0_14, %c1_15] : memref<6x4xf32, #tpu.memory_space<smem>>
    %c1_16 = arith.constant 1 : index
    %c1_17 = arith.constant 1 : index
    %39 = memref.load %arg1[%c1_16, %c1_17] : memref<6x4xf32, #tpu.memory_space<smem>>
    %c2_18 = arith.constant 2 : index
    %c1_19 = arith.constant 1 : index
    %40 = memref.load %arg1[%c2_18, %c1_19] : memref<6x4xf32, #tpu.memory_space<smem>>
    %c3_20 = arith.constant 3 : index
    %c1_21 = arith.constant 1 : index
    %41 = memref.load %arg1[%c3_20, %c1_21] : memref<6x4xf32, #tpu.memory_space<smem>>
    %c4_22 = arith.constant 4 : index
    %c1_23 = arith.constant 1 : index
    %42 = memref.load %arg1[%c4_22, %c1_23] : memref<6x4xf32, #tpu.memory_space<smem>>
    %43 = vector.broadcast %38 : f32 to vector<16x512xf32>
    %44 = arith.mulf %43, %5 : vector<16x512xf32>
    %45 = vector.broadcast %39 : f32 to vector<1x512xf32>
    %46 = arith.mulf %45, %1 : vector<1x512xf32>
    %47 = vector.broadcast %46 : vector<1x512xf32> to vector<16x512xf32>
    %48 = arith.addf %44, %47 : vector<16x512xf32>
    %49 = vector.broadcast %40 : f32 to vector<16x512xf32>
    %50 = arith.mulf %49, %3 : vector<16x512xf32>
    %51 = arith.addf %48, %50 : vector<16x512xf32>
    %52 = vector.broadcast %41 : f32 to vector<16x512xf32>
    %53 = arith.addf %51, %52 : vector<16x512xf32>
    %cst_24 = arith.constant dense<0xFF800000> : vector<512xf32>
    %54 = vector.multi_reduction <maximumf>, %53, %cst_24 [0] : vector<16x512xf32> to vector<512xf32>
    %55 = vector.shape_cast %54 : vector<512xf32> to vector<1x512xf32>
    %56 = vector.broadcast %55 : vector<1x512xf32> to vector<16x512xf32>
    %57 = arith.subf %53, %56 : vector<16x512xf32>
    %58 = math.exp %57 : vector<16x512xf32>
    %cst_25 = arith.constant dense<0.000000e+00> : vector<512xf32>
    %59 = vector.multi_reduction <add>, %58, %cst_25 [0] : vector<16x512xf32> to vector<512xf32>
    %60 = vector.shape_cast %59 : vector<512xf32> to vector<1x512xf32>
    %61 = arith.mulf %58, %3 : vector<16x512xf32>
    %cst_26 = arith.constant dense<0.000000e+00> : vector<512xf32>
    %62 = vector.multi_reduction <add>, %61, %cst_26 [0] : vector<16x512xf32> to vector<512xf32>
    %63 = vector.shape_cast %62 : vector<512xf32> to vector<1x512xf32>
    %64 = vector.broadcast %42 : f32 to vector<1x512xf32>
    %65 = arith.mulf %64, %63 : vector<1x512xf32>
    %66 = tpu.reciprocal %60 {approx = true} : vector<1x512xf32> -> vector<1x512xf32>
    %67 = arith.mulf %65, %66 : vector<1x512xf32>
    %68 = arith.addf %37, %67 : vector<1x512xf32>
    %c0_27 = arith.constant 0 : index
    %c2_28 = arith.constant 2 : index
    %69 = memref.load %arg1[%c0_27, %c2_28] : memref<6x4xf32, #tpu.memory_space<smem>>
    %c1_29 = arith.constant 1 : index
    %c2_30 = arith.constant 2 : index
    %70 = memref.load %arg1[%c1_29, %c2_30] : memref<6x4xf32, #tpu.memory_space<smem>>
    %c2_31 = arith.constant 2 : index
    %c2_32 = arith.constant 2 : index
    %71 = memref.load %arg1[%c2_31, %c2_32] : memref<6x4xf32, #tpu.memory_space<smem>>
    %c3_33 = arith.constant 3 : index
    %c2_34 = arith.constant 2 : index
    %72 = memref.load %arg1[%c3_33, %c2_34] : memref<6x4xf32, #tpu.memory_space<smem>>
    %c4_35 = arith.constant 4 : index
    %c2_36 = arith.constant 2 : index
    %73 = memref.load %arg1[%c4_35, %c2_36] : memref<6x4xf32, #tpu.memory_space<smem>>
    %74 = vector.broadcast %69 : f32 to vector<16x512xf32>
    %75 = arith.mulf %74, %5 : vector<16x512xf32>
    %76 = vector.broadcast %70 : f32 to vector<1x512xf32>
    %77 = arith.mulf %76, %1 : vector<1x512xf32>
    %78 = vector.broadcast %77 : vector<1x512xf32> to vector<16x512xf32>
    %79 = arith.addf %75, %78 : vector<16x512xf32>
    %80 = vector.broadcast %71 : f32 to vector<16x512xf32>
    %81 = arith.mulf %80, %3 : vector<16x512xf32>
    %82 = arith.addf %79, %81 : vector<16x512xf32>
    %83 = vector.broadcast %72 : f32 to vector<16x512xf32>
    %84 = arith.addf %82, %83 : vector<16x512xf32>
    %cst_37 = arith.constant dense<0xFF800000> : vector<512xf32>
    %85 = vector.multi_reduction <maximumf>, %84, %cst_37 [0] : vector<16x512xf32> to vector<512xf32>
    %86 = vector.shape_cast %85 : vector<512xf32> to vector<1x512xf32>
    %87 = vector.broadcast %86 : vector<1x512xf32> to vector<16x512xf32>
    %88 = arith.subf %84, %87 : vector<16x512xf32>
    %89 = math.exp %88 : vector<16x512xf32>
    %cst_38 = arith.constant dense<0.000000e+00> : vector<512xf32>
    %90 = vector.multi_reduction <add>, %89, %cst_38 [0] : vector<16x512xf32> to vector<512xf32>
    %91 = vector.shape_cast %90 : vector<512xf32> to vector<1x512xf32>
    %92 = arith.mulf %89, %3 : vector<16x512xf32>
    %cst_39 = arith.constant dense<0.000000e+00> : vector<512xf32>
    %93 = vector.multi_reduction <add>, %92, %cst_39 [0] : vector<16x512xf32> to vector<512xf32>
    %94 = vector.shape_cast %93 : vector<512xf32> to vector<1x512xf32>
    %95 = vector.broadcast %73 : f32 to vector<1x512xf32>
    %96 = arith.mulf %95, %94 : vector<1x512xf32>
    %97 = tpu.reciprocal %91 {approx = true} : vector<1x512xf32> -> vector<1x512xf32>
    %98 = arith.mulf %96, %97 : vector<1x512xf32>
    %99 = arith.addf %68, %98 : vector<1x512xf32>
    %c0_40 = arith.constant 0 : index
    %c3_41 = arith.constant 3 : index
    %100 = memref.load %arg1[%c0_40, %c3_41] : memref<6x4xf32, #tpu.memory_space<smem>>
    %c1_42 = arith.constant 1 : index
    %c3_43 = arith.constant 3 : index
    %101 = memref.load %arg1[%c1_42, %c3_43] : memref<6x4xf32, #tpu.memory_space<smem>>
    %c2_44 = arith.constant 2 : index
    %c3_45 = arith.constant 3 : index
    %102 = memref.load %arg1[%c2_44, %c3_45] : memref<6x4xf32, #tpu.memory_space<smem>>
    %c3_46 = arith.constant 3 : index
    %c3_47 = arith.constant 3 : index
    %103 = memref.load %arg1[%c3_46, %c3_47] : memref<6x4xf32, #tpu.memory_space<smem>>
    %c4_48 = arith.constant 4 : index
    %c3_49 = arith.constant 3 : index
    %104 = memref.load %arg1[%c4_48, %c3_49] : memref<6x4xf32, #tpu.memory_space<smem>>
    %105 = vector.broadcast %100 : f32 to vector<16x512xf32>
    %106 = arith.mulf %105, %5 : vector<16x512xf32>
    %107 = vector.broadcast %101 : f32 to vector<1x512xf32>
    %108 = arith.mulf %107, %1 : vector<1x512xf32>
    %109 = vector.broadcast %108 : vector<1x512xf32> to vector<16x512xf32>
    %110 = arith.addf %106, %109 : vector<16x512xf32>
    %111 = vector.broadcast %102 : f32 to vector<16x512xf32>
    %112 = arith.mulf %111, %3 : vector<16x512xf32>
    %113 = arith.addf %110, %112 : vector<16x512xf32>
    %114 = vector.broadcast %103 : f32 to vector<16x512xf32>
    %115 = arith.addf %113, %114 : vector<16x512xf32>
    %cst_50 = arith.constant dense<0xFF800000> : vector<512xf32>
    %116 = vector.multi_reduction <maximumf>, %115, %cst_50 [0] : vector<16x512xf32> to vector<512xf32>
    %117 = vector.shape_cast %116 : vector<512xf32> to vector<1x512xf32>
    %118 = vector.broadcast %117 : vector<1x512xf32> to vector<16x512xf32>
    %119 = arith.subf %115, %118 : vector<16x512xf32>
    %120 = math.exp %119 : vector<16x512xf32>
    %cst_51 = arith.constant dense<0.000000e+00> : vector<512xf32>
    %121 = vector.multi_reduction <add>, %120, %cst_51 [0] : vector<16x512xf32> to vector<512xf32>
    %122 = vector.shape_cast %121 : vector<512xf32> to vector<1x512xf32>
    %123 = arith.mulf %120, %3 : vector<16x512xf32>
    %cst_52 = arith.constant dense<0.000000e+00> : vector<512xf32>
    %124 = vector.multi_reduction <add>, %123, %cst_52 [0] : vector<16x512xf32> to vector<512xf32>
    %125 = vector.shape_cast %124 : vector<512xf32> to vector<1x512xf32>
    %126 = vector.broadcast %104 : f32 to vector<1x512xf32>
    %127 = arith.mulf %126, %125 : vector<1x512xf32>
    %128 = tpu.reciprocal %122 {approx = true} : vector<1x512xf32> -> vector<1x512xf32>
    %129 = arith.mulf %127, %128 : vector<1x512xf32>
    %130 = arith.addf %99, %129 : vector<1x512xf32>
    %c5 = arith.constant 5 : index
    %c0_53 = arith.constant 0 : index
    %131 = memref.load %arg1[%c5, %c0_53] : memref<6x4xf32, #tpu.memory_space<smem>>
    %132 = vector.broadcast %131 : f32 to vector<1x512xf32>
    %133 = arith.addf %130, %132 : vector<1x512xf32>
    %134 = arith.negf %133 : vector<1x512xf32>
    %135 = math.exp %134 : vector<1x512xf32>
    %cst_54 = arith.constant 1.000000e+00 : f32
    %136 = vector.broadcast %cst_54 : f32 to vector<1x512xf32>
    %137 = arith.addf %136, %135 : vector<1x512xf32>
    %138 = arith.divf %136, %137 : vector<1x512xf32>
    %139 = arith.mulf %1, %138 : vector<1x512xf32>
    %c0_55 = arith.constant 0 : index
    %c0_56 = arith.constant 0 : index
    %c0_57 = arith.constant 0 : index
    %140 = vector.load %arg4[%c0_55, %c0_56, %c0_57] : memref<1x1x512xf32, #tpu.memory_space<vmem>>, vector<1x1x512xf32>
    %141 = vector.shape_cast %140 : vector<1x1x512xf32> to vector<1x512xf32>
    %142 = vector.shape_cast %139 : vector<1x512xf32> to vector<1x1x512xf32>
    tpu.vector_store %arg4[%c0_55, %c0_56, %c0_57], %142 {strides = array<i32>} : memref<1x1x512xf32, #tpu.memory_space<vmem>>, vector<1x1x512xf32>,
    return
  }
  func.func @transform_0(%arg0: i32) -> (i32, i32) {
    %c0_i32 = arith.constant 0 : i32
    %c0_i32_0 = arith.constant 0 : i32
    %c0_i32_1 = arith.constant 0 : i32
    return %c0_i32, %c0_i32_0 : i32, i32
  }
  func.func @transform_1(%arg0: i32) -> (i32, i32, i32) {
    %c0_i32 = arith.constant 0 : i32
    %c0_i32_0 = arith.constant 0 : i32
    %c0_i32_1 = arith.constant 0 : i32
    return %arg0, %c0_i32, %c0_i32_0 : i32, i32, i32
  }
  func.func @transform_2(%arg0: i32) -> (i32, i32, i32) {
    %c0_i32 = arith.constant 0 : i32
    %c0_i32_0 = arith.constant 0 : i32
    %c0_i32_1 = arith.constant 0 : i32
    return %arg0, %c0_i32, %c0_i32_0 : i32, i32, i32
  }
  func.func @transform_3(%arg0: i32) -> (i32, i32, i32) {
    %c0_i32 = arith.constant 0 : i32
    %c0_i32_0 = arith.constant 0 : i32
    %c0_i32_1 = arith.constant 0 : i32
    return %arg0, %c0_i32, %c0_i32_0 : i32, i32, i32
  }
}

</mosaic_0001>

<bundles_post_ra>
// kernel: tpu_custom_call.1
= control target key start
LH: loop header
LB: loop body
LE: loop exit
PB: predicated region body
PF: predicated region fallthrough
CT: control target
= control target key end

     0   :  { %8 = vsyncpa [#allocation5], 0  ;;  %s2403_s0 = inlined_call_operand.vmem [shape: f32[6,4], index: 0, kind: input, shape index: {}]   ;;  %s2404_s1 = inlined_call_operand.vmem [shape: f32[2,1,512], index: 1, kind: input, shape index: {}]   ;;  %s2405_s2 = inlined_call_operand.hbm [shape: f32[2,16,512], index: 2, kind: input, shape index: {}]   ;;  %s2406_s3 = inlined_call_operand.hbm [shape: f32[2,1,512], index: 3, kind: output, shape index: {}]  }
   0x1   :  { %9 = vsyncpa [#allocation3], 0 }
   0x2   :  { %11 = vsyncpa [#allocation3 + $0x1], 0 }
   0x3   :  { %12 = vsyncpa [#allocation4], 0 }
   0x4   :  { %14 = vsyncpa [#allocation4 + $0x1], 0  ;;  %s1615_s12 = smov 0   ;;  %s1617_s13 = smov 0  }
   0x5   :  { %s1619_s14 = smov 0   ;;  %s1621_s15 = smov 0  }
   0x6 LB: > { %s1636_s16 = sadd.s32 4294967295, %s1587_s15   ;;  %s1248_s17 = sadd.s32 4294967294, %s1587_s15   ;;  %s1587_s15 = sphi %s1621_s15, %s2482_s15   ;;  %s1583_s14 = sphi %s1619_s14, %s2481_s14   ;;  %s1579_s13 = sphi %s1617_s13, %s2480_s13   ;;  %s1575_s12 = sphi %s1615_s12, %s2479_s12  }
   0x7   : > { %s1640_s18 = sadd.s32 1, %s1587_s15   ;;  %s74_s19 = sadd.s32 1, %s1583_s14 }
   0x8   : > { %s71_s20 = ssub.s32 %s1587_s15, %s1640_s18  ;;  %p81_p0 = scmp.ne.s32.totalorder %s1583_s14, %s1579_s13 }
   0x9   : > { %p72_p1 = scmp.eq.s32.totalorder %s71_s20, 0  ;;  %p82_p2 = scmp.eq.s32.totalorder %s1587_s15, 0 }
   0xa   : > { %p87_p3 = scmp.ne.s32.totalorder %s1579_s13, %s1575_s12  ;;  %p2408_p4 = scmp.eq.s32.totalorder %s1636_s16, 0 }
   0xb   : > { %s1652_s21 = scalar_select %p72_p1, %s1583_s14, %s74_s19  }
   0xc   : > { %p1654_p5 = por %p82_p2, %p81_p0  ;;  %p1660_p6 = por %p2408_p4, %p87_p3 }
   0xd   : > { %p111_p7 = scmp.eq.s32.totalorder %s1636_s16, 1  ;;  %p117_p8 = scmp.eq.s32.totalorder %s1248_s17, 1 }
   0xe   : > { %s2425_s23 = scalar_select %p1660_p6, 1, 0 }
   0xf   : > { %p1249_p9 = scmp.ge.s32.totalorder %s1587_s15, 1  ;;  %p124_p10 = scmp.lt.s32.totalorder %s1587_s15, 3 }
  0x10   : > { %p1667_p11 = por %p111_p7, %p81_p0  ;;  %p1671_p12 = por %p117_p8, %p87_p3 }
  0x11   : > { %p1675_p13 = pnand %p1249_p9, %p124_p10  ;;  %s137_s29 = sshll.u32 %s2403_s0, 4  ;;  %s138_s29 = int_to_ptr.vmem [resolvable:$true] %s137_s29 }
  0x12   : > { %s2426_s24 = scalar_select %p1667_p11, 1, 0 }
  0x13   : > { %s2427_s25 = scalar_select %p1671_p12, 1, 0 }
  0x14   : > { %p1299_p1 = pneg %p1675_p13  ;;  %p1312_p2 = scmp.lt.s32.totalorder %s1587_s15, 2 }
  0x15   : > { %s155_s4 = sand.u32 1, %s1583_s14   ;;  %s1472_s7 = scalar_lea.vmem %s138_s29, 128 }
  0x16   : > { %p1688_p7 = pnand %p1299_p1, %p2408_p4  ;;  %p1695_p3 = pnand %p1312_p2, %p1654_p5 }
  0x17   : > { %s1252_s6 = sshll.u32 %s155_s4, 6  ;;  %p1473_p8 = scmp.ne.s32.totalorder %s138_s29, %s1472_s7 }
  0x18   : > { %p1474_p9 = pneg %p1688_p7  ;;  %p1480_p12 = scmp.lt.s32.totalorder %s138_s29, %s138_s29 }
  0x19   : > { %p1481_p11 = scmp.lt.s32.totalorder %s1472_s7, %s1472_s7 }
  0x1a   : > { %p1475_p10 = pnand %p1474_p9, %p1473_p8 }
  0x1b   : > { %p1482_p1 = por %p1481_p11, %p1480_p12 }
  0x1c   : > { %p1476_p0 = pneg %p1475_p10 }
  0x1e   : > { %p1483_p4 = pnand %p1482_p1, %p1476_p0 }
  0x20   : > { %1486 = shalt.err (!%p1483_p4)
}
  0x21   : > { %s1589_s8 = smov [#allocation2]   ;;  %s1289_s9 = sshll.u32 %s1587_s15, 10 }
  0x22   : > { %1302 = dma.vmem_to_smem (!%p1688_p7), %s138_s29, 128, %s1589_s8, [#allocation5]  }
  0x23   : > { %s159_s10 = scalar_lea.vmem [#allocation6], %s1252_s6  ;;  %s1707_s20 = scalar_lea.hbm %s2405_s2, %s1289_s9 }
  0x24   : > { %s166_s11 = sshll.u32 %s159_s10, 4  ;;  %s1711_s22 = scalar_lea.sflag [#allocation3], %s155_s4  ;;  %s1709_s11 = int_to_ptr.vmem [resolvable:$true] %s166_s11 }
  0x25   : > { %s1487_s27 = scalar_lea.hbm %s1707_s20, 1024  ;;  %p1489_p5 = pneg %p1695_p3 }
  0x26   : > { %p1488_p4 = scmp.ne.s32.totalorder %s1707_s20, %s1487_s27  ;;  %s1492_s30 = scalar_lea.hbm %s2405_s2, 2048 }
  0x27   : > { %p1493_p0 = scmp.lt.u32.totalorder %s1707_s20, %s2405_s2  ;;  %p1494_p2 = scmp.lt.u32.totalorder %s1492_s30, %s1487_s27 }
  0x28   : > { %p1490_p11 = pnand %p1489_p5, %p1488_p4  ;;  %p1496_p8 = scmp.lt.u32.totalorder %s1487_s27, %s1707_s20 }
  0x29   : > { %p1495_p7 = por %p1494_p2, %p1493_p0 }
  0x2a   : > { %p1491_p12 = pneg %p1490_p11 }
  0x2b   : > { %p1497_p9 = por %p1496_p8, %p1495_p7 }
  0x2d   : > { %p1498_p10 = pnand %p1497_p9, %p1491_p12 }
  0x2f   : > { %1501 = shalt.err (!%p1498_p10)
}
  0x30   : > { %s1502_s4 = scalar_lea.vmem %s1709_s11, 1024  ;;  %s1590_s8 = smov [#allocation6]  }
  0x31   : > { %p1503_p1 = scmp.ne.s32.totalorder %s1709_s11, %s1502_s4  ;;  %s1507_s9 = sshll.u32 %s1590_s8, 4  ;;  %s1508_s9 = int_to_ptr.vmem [resolvable:$false] %s1507_s9 }
  0x32   : > { %s1509_s10 = scalar_lea.vmem %s1508_s9, 2048  ;;  %p1510_p6 = scmp.lt.s32.totalorder %s1709_s11, %s1508_s9 }
  0x33   : > { %p1505_p4 = pnand %p1503_p1, %p1489_p5  ;;  %p1511_p0 = scmp.lt.s32.totalorder %s1509_s10, %s1502_s4 }
  0x35   : > { %p1506_p11 = pneg %p1505_p4  ;;  %p1512_p2 = por %p1511_p0, %p1510_p6 }
  0x37   : > { %p1513_p7 = pnand %p1512_p2, %p1506_p11 }
  0x39   : > { %1516 = shalt.err (!%p1513_p7)
}
  0x3a   : > { %s1591_s17 = smov 512   ;;  %s1592_s19 = smov 32  }
  0x3b   : > { %1306 = dma.hbm_to_vmem [thread:$0]  (!%p1695_p3), %s1707_s20, 1024, %s1709_s11, %s1711_s22, %s1591_s17, %s1591_s17, %s1592_s19  }
  0x3c   : > { %178 = sbr.rel (%p1675_p13) target bundleno = 329 (0x149), region = 32 }
  0x43   : > { %p2431_p5 = scmp.eq.s32.totalorder %s1636_s16, 0 }
  0x45   : > { %1562 = dma.done.wait (%p2431_p5), [#allocation5], 128   ;;  %p2432_p12 = pmov %p2431_p5 }
  0x46   : > { %s1746_s27 = sand.u32 1, %s1579_s13   ;;  %p2433_p6 = scmp.ne.s32.totalorder %s2425_s23, 0 }
  0x47   : > { %1564 = vsyncadd (%p2432_p12), [#allocation5], 4294967168  ;;  %s1257_s28 = sshll.u32 %s1746_s27, 6  ;;  %s185_s29 = scalar_lea.sflag [#allocation3], %s1746_s27 }
  0x48   : > { %s1750_s30 = scalar_lea.vmem [#allocation6], %s1257_s28 }
  0x49   : > { %1566 = dma.done.wait (%p2433_p6), %s185_s29, 1024  }
  0x4a   : > { %1568 = vsyncadd (%p2433_p6), %s185_s29, 4294966272 }
  0x4b   : > { %193 = sfence }
  0x4c   : > { %p216_p13 = scmp.lt.s32.totalorder %s1636_s16, 1  ;;  %v2410_v0 = vlaneseq  ;;  %s258_s26 = sld [smem:[#allocation2]]  ;;  %v1781_v6 = vld [vmem:[%s1750_s30] sm:$0xff]  ;;  %v1784_v7 = vld [vmem:[%s1750_s30 + $0x8] sm:$0xff]  ;;  %v1787_v8 = vld [vmem:[%s1750_s30 + $0x10] sm:$0xff] }
  0x4d   : > { %s1761_s11 = sld [smem:[#allocation2 + $0x80]]  ;;  %v1793_v10 = vld [vmem:[%s1750_s30 + $0x18] sm:$0xff]  ;;  %v1796_v11 = vld [vmem:[%s1750_s30 + $0x20] sm:$0xff]  ;;  %v1799_v12 = vld [vmem:[%s1750_s30 + $0x28] sm:$0xff]  ;;  %s1265_s8 = sld [smem:[#allocation2 + $0x81]] }
  0x4e   : > { %s217_s5 = scalar_select %p216_p13, %s1636_s16, 1  ;;  %v1759_v1 = vshrl.u32 %v2410_v0, 7  ;;  %v1802_v13 = vld [vmem:[%s1750_s30 + $0x30] sm:$0xff]  ;;  %v1805_v14 = vld [vmem:[%s1750_s30 + $0x38] sm:$0xff] }
  0x4f   : > { %s1261_s7 = sld [smem:[#allocation2 + $0x100]]  ;;  %s1264_s9 = sld [smem:[#allocation2 + $0x1]] }
  0x50   : > { %2434 = vst [vmem:[#allocation11_spill] sm:$0xff] %v1759_v1  ;;  %s1259_s23 = sshll.u32 %s217_s5, 2  ;;  %v1764_v2 = vsub.s32 0, %v1759_v1  ;;  %v1767_v3 = vsub.s32 1, %v1759_v1  ;;  %v1770_v4 = vsub.s32 2, %v1759_v1  ;;  %v1773_v5 = vsub.s32 3, %v1759_v1 }
  0x51   : > { %s1778_s6 = scalar_lea.vmem %s2404_s1, %s1259_s23  ;;  %s1262_s4 = sld [smem:[#allocation2 + $0x180]] }
  0x52   : > { %2435 = vst [vmem:[#allocation12_spill] sm:$0xff] %v1767_v3  ;;  %2436 = vst [vmem:[#allocation13_spill] sm:$0xff] %v1770_v4  ;;  %v1790_v9 = vld [vmem:[%s1778_s6] sm:$0xf]  ;;  %v263_v19 = vstv %s258_s26  ;;  %s1266_s10 = sld [smem:[#allocation2 + $0x101]]  ;;  %s1269_s19 = sld [smem:[#allocation2 + $0x2]] }
  0x53   : > { %2437 = vst [vmem:[#allocation14_spill] sm:$0xff] %v1773_v5  ;;  %v233_v15 = vrot.slane %v1790_v9, %v1764_v2  ;;  %v237_v16 = vrot.slane %v1790_v9, %v1767_v3  ;;  %v241_v17 = vrot.slane %v1790_v9, %v1770_v4  ;;  %v245_v18 = vrot.slane %v1790_v9, %v1773_v5  ;;  %s1895_s17 = sld [smem:[#allocation2 + $0x181]]  ;;  %s1943_s28 = sld [smem:[#allocation2 + $0x82]] }
  0x54   : > { %v272_v34 = vstv %s1761_s11  ;;  %s1955_s29 = sld [smem:[#allocation2 + $0x102]]  ;;  %s2025_s5 = sld [smem:[#allocation2 + $0x200]] }
  0x55   : > { %v1816_v20 = vmul.f32 %v233_v15, %v1781_v6  ;;  %v1819_v21 = vmul.f32 %v237_v16, %v1784_v7  ;;  %v1822_v22 = vmul.f32 %v241_v17, %v1787_v8  ;;  %v1825_v23 = vmul.f32 %v245_v18, %v1793_v10  ;;  %s1995_s26 = sld [smem:[#allocation2 + $0x182]]  ;;  %s2032_s11 = sld [smem:[#allocation2 + $0x201]] }
  0x56   : > { %v1828_v24 = vmul.f32 %v233_v15, %v1796_v11  ;;  %v1831_v25 = vmul.f32 %v237_v16, %v1799_v12  ;;  %v1834_v26 = vmul.f32 %v241_v17, %v1802_v13  ;;  %v1837_v27 = vmul.f32 %v245_v18, %v1805_v14  ;;  %s2070_s23 = sld [smem:[#allocation2 + $0x3]]  ;;  %p2476_p8 = scmp.ne.s32.totalorder %s2426_s24, 0 }
  0x57   : > { %2438 = vst [vmem:[#allocation15_spill] sm:$0xff] %v1822_v22  ;;  %v264_v28 = vmul.f32 %v263_v19, %v1816_v20  ;;  %v265_v29 = vmul.f32 %v263_v19, %v1819_v21  ;;  %v266_v30 = vmul.f32 %v263_v19, %v1822_v22  ;;  %v267_v31 = vmul.f32 %v263_v19, %v1825_v23  ;;  %s2078_s20 = sld [smem:[#allocation2 + $0x83]] }
  0x58   : > { %2439 = vst [vmem:[#allocation16_spill] sm:$0xff] %v1828_v24  ;;  %2440 = vst [vmem:[#allocation17_spill] sm:$0xff] %v1831_v25  ;;  %v268_v32 = vmul.f32 %v263_v19, %v1828_v24  ;;  %v269_v33 = vmul.f32 %v263_v19, %v1831_v25  ;;  %v303_v35 = vstv %s1261_s7  ;;  %v270_v36 = vmul.f32 %v263_v19, %v1834_v26  ;;  %s2093_s22 = sld [smem:[#allocation2 + $0x103]] }
  0x59   : > { %2441 = vst [vmem:[#allocation18_spill] sm:$0xff] %v1834_v26  ;;  %2442 = vst [vmem:[#allocation19_spill] sm:$0xff] %v1837_v27  ;;  %v271_v37 = vmul.f32 %v263_v19, %v1837_v27  ;;  %v273_v38 = vmul.f32 %v272_v34, %v1790_v9  ;;  %v320_v39 = vstv %s1262_s4  ;;  %v304_v40 = vmul.f32 %v303_v35, %v1781_v6  ;;  %s2108_s7 = sld [smem:[#allocation2 + $0x183]] }
  0x5a   : > { %v305_v41 = vmul.f32 %v303_v35, %v1784_v7  ;;  %v306_v42 = vmul.f32 %v303_v35, %v1787_v8  ;;  %v307_v43 = vmul.f32 %v303_v35, %v1793_v10  ;;  %v308_v48 = vmul.f32 %v303_v35, %v1796_v11  ;;  %s2328_s4 = sld [smem:[#allocation2 + $0x203]] }
  0x5b   : > { %v278_v44 = vrot.slane %v273_v38, %v1764_v2  ;;  %v282_v45 = vrot.slane %v273_v38, %v1767_v3  ;;  %v286_v46 = vrot.slane %v273_v38, %v1770_v4  ;;  %v290_v47 = vrot.slane %v273_v38, %v1773_v5 }
  0x5c   : > { %v309_v49 = vmul.f32 %v303_v35, %v1799_v12  ;;  %v310_v50 = vmul.f32 %v303_v35, %v1802_v13  ;;  %v311_v51 = vmul.f32 %v303_v35, %v1805_v14 }
  0x5d   : > { %v295_v52 = vadd.f32 %v278_v44, %v264_v28  ;;  %v296_v53 = vadd.f32 %v282_v45, %v265_v29  ;;  %v297_v54 = vadd.f32 %v286_v46, %v266_v30  ;;  %v298_v55 = vadd.f32 %v290_v47, %v267_v31 }
  0x5e   : > { %v299_v56 = vadd.f32 %v278_v44, %v268_v32  ;;  %v300_v57 = vadd.f32 %v282_v45, %v269_v33  ;;  %v301_v58 = vadd.f32 %v286_v46, %v270_v36  ;;  %v302_v59 = vadd.f32 %v290_v47, %v271_v37 }
  0x5f   : > { %v312_v60 = vadd.f32 %v304_v40, %v295_v52  ;;  %v313_v61 = vadd.f32 %v305_v41, %v296_v53  ;;  %v314_v62 = vadd.f32 %v306_v42, %v297_v54  ;;  %v315_v63 = vadd.f32 %v307_v43, %v298_v55 }
  0x60   : > { %v316_v15 = vadd.f32 %v308_v48, %v299_v56  ;;  %v317_v16 = vadd.f32 %v309_v49, %v300_v57  ;;  %v318_v17 = vadd.f32 %v310_v50, %v301_v58  ;;  %v319_v18 = vadd.f32 %v311_v51, %v302_v59 }
  0x61   : > { %v1861_v19 = vadd.f32 %v320_v39, %v312_v60  ;;  %v1863_v34 = vadd.f32 %v320_v39, %v313_v61  ;;  %v1865_v28 = vadd.f32 %v320_v39, %v314_v62  ;;  %v1867_v29 = vadd.f32 %v320_v39, %v315_v63 }
  0x62   : > { %v1869_v30 = vadd.f32 %v320_v39, %v316_v15  ;;  %v1871_v31 = vadd.f32 %v320_v39, %v317_v16  ;;  %v1873_v32 = vadd.f32 %v320_v39, %v318_v17  ;;  %v1875_v33 = vadd.f32 %v320_v39, %v319_v18 }
  0x63   : > { %v476_v50 = vstv %s1265_s8  ;;  %v467_v55 = vstv %s1264_s9  ;;  %v507_v58 = vstv %s1266_s10  ;;  %s1279_s8 = sld [smem:[#allocation2 + $0x280]]  ;;  %s1258_s9 = sshll.u32 %s1746_s27, 2 }
  0x64   : > { %v329_v35 = vmax.f32 %v1861_v19, %v1869_v30  ;;  %v336_v36 = vmax.f32 %v1863_v34, %v1871_v31  ;;  %v343_v37 = vmax.f32 %v1865_v28, %v1873_v32  ;;  %v350_v38 = vmax.f32 %v1867_v29, %v1875_v33  ;;  %s1290_s10 = sshll.u32 %s1636_s16, 6 }
  0x65   : > { %v477_v56 = vmul.f32 %v476_v50, %v1790_v9  ;;  %v468_v60 = vmul.f32 %v467_v55, %v1816_v20  ;;  %v469_v61 = vmul.f32 %v467_v55, %v1819_v21  ;;  %v470_v62 = vmul.f32 %v467_v55, %v1822_v22 }
  0x66   : > { %v330_v40 = vrot.slane %v329_v35, 4  ;;  %v337_v41 = vrot.slane %v336_v36, 4  ;;  %v344_v42 = vrot.slane %v343_v37, 4  ;;  %v351_v43 = vrot.slane %v350_v38, 4 }
  0x67   : > { %v482_v16 = vrot.slane %v477_v56, %v1764_v2  ;;  %v486_v17 = vrot.slane %v477_v56, %v1767_v3  ;;  %v471_v18 = vmul.f32 %v467_v55, %v1825_v23  ;;  %v513_v1 = vmul.f32 %v507_v58, %v1799_v12 }
  0x68   : > { %v331_v44 = vmax.f32 %v329_v35, %v330_v40  ;;  %v338_v39 = vmax.f32 %v336_v36, %v337_v41  ;;  %v345_v46 = vmax.f32 %v343_v37, %v344_v42  ;;  %v352_v47 = vmax.f32 %v350_v38, %v351_v43 }
  0x69   : > { %v472_v35 = vmul.f32 %v467_v55, %v1828_v24  ;;  %v490_v36 = vrot.slane %v477_v56, %v1770_v4  ;;  %v494_v37 = vrot.slane %v477_v56, %v1773_v5  ;;  %v473_v40 = vmul.f32 %v467_v55, %v1831_v25 }
  0x6a   : > { %v332_v45 = vrot.slane %v331_v44, 2  ;;  %v339_v49 = vrot.slane %v338_v39, 2  ;;  %v346_v51 = vrot.slane %v345_v46, 2  ;;  %v353_v52 = vrot.slane %v352_v47, 2 }
  0x6b   : > { %v474_v41 = vmul.f32 %v467_v55, %v1834_v26  ;;  %v475_v42 = vmul.f32 %v467_v55, %v1837_v27  ;;  %v501_v50 = vadd.f32 %v490_v36, %v470_v62  ;;  %v504_v0 = vadd.f32 %v486_v17, %v473_v40 }
  0x6c   : > { %v333_v48 = vmax.f32 %v331_v44, %v332_v45  ;;  %v340_v54 = vmax.f32 %v338_v39, %v339_v49  ;;  %v347_v57 = vmax.f32 %v345_v46, %v346_v51  ;;  %v354_v59 = vmax.f32 %v352_v47, %v353_v52 }
  0x6d   : > { %v508_v44 = vmul.f32 %v507_v58, %v1781_v6  ;;  %v509_v39 = vmul.f32 %v507_v58, %v1784_v7  ;;  %v510_v45 = vmul.f32 %v507_v58, %v1787_v8  ;;  %v500_v49 = vadd.f32 %v486_v17, %v469_v61 }
  0x6e   : > { %v334_v53 = vrot.slane %v333_v48, 1  ;;  %v341_v15 = vrot.slane %v340_v54, 1  ;;  %v348_v38 = vrot.slane %v347_v57, 1  ;;  %v355_v43 = vrot.slane %v354_v59, 1 }
  0x6f   : > { %v502_v51 = vadd.f32 %v494_v37, %v471_v18  ;;  %v503_v52 = vadd.f32 %v482_v16, %v472_v35  ;;  %v505_v4 = vadd.f32 %v490_v36, %v474_v41  ;;  %v506_v3 = vadd.f32 %v494_v37, %v475_v42 }
  0x70   : > { %v335_v63 = vmax.f32 %v333_v48, %v334_v53  ;;  %v342_v46 = vmax.f32 %v340_v54, %v341_v15  ;;  %v499_v48 = vadd.f32 %v482_v16, %v468_v60  ;;  %v512_v53 = vmul.f32 %v507_v58, %v1796_v11 }
  0x71   : > { %v349_v56 = vmax.f32 %v347_v57, %v348_v38  ;;  %v356_v5 = vmax.f32 %v354_v59, %v355_v43  ;;  %v511_v54 = vmul.f32 %v507_v58, %v1793_v10  ;;  %v514_v62 = vmul.f32 %v507_v58, %v1802_v13 }
  0x72   : > { %v357_v47 = vsub.f32 %v1861_v19, %v335_v63  ;;  %v361_v55 = vsub.f32 %v1869_v30, %v335_v63  ;;  %v358_v19 = vsub.f32 %v1863_v34, %v342_v46  ;;  %v362_v60 = vsub.f32 %v1871_v31, %v342_v46 }
  0x73   : > { %v515_v57 = vmul.f32 %v507_v58, %v1805_v14  ;;  %v516_v15 = vadd.f32 %v508_v44, %v499_v48  ;;  %v517_v30 = vadd.f32 %v509_v39, %v500_v49  ;;  %v520_v63 = vadd.f32 %v512_v53, %v503_v52 }
  0x74   : > { %v365_v61 = vmul.f32 1.442695, %v357_v47  ;;  %v359_v16 = vsub.f32 %v1865_v28, %v349_v56  ;;  %v373_v17 = vmul.f32 1.442695, %v361_v55  ;;  %v521_v59 = vadd.f32 %v513_v1, %v504_v0 }
  0x75   : > { %v524_v18 = vstv %s1895_s17  ;;  %v360_v35 = vsub.f32 %v1867_v29, %v356_v5  ;;  %v363_v36 = vsub.f32 %v1873_v32, %v349_v56  ;;  %v364_v34 = vsub.f32 %v1875_v33, %v356_v5  ;;  %s215_s17 = scalar_lea.vmem [#allocation7], %s1258_s9 }
  0x76   : > { %v518_v31 = vadd.f32 %v510_v45, %v501_v50  ;;  %1351 = vpow2.f32 %v365_v61  ;;  %v367_v37 = vmul.f32 1.442695, %v358_v19  ;;  %v375_v38 = vmul.f32 1.442695, %v362_v60 }
  0x77   : > { %v519_v40 = vadd.f32 %v511_v54, %v502_v51  ;;  %v522_v58 = vadd.f32 %v514_v62, %v505_v4  ;;  %v523_v41 = vadd.f32 %v515_v57, %v506_v3  ;;  %v1917_v42 = vadd.f32 %v524_v18, %v516_v15 }
  0x78   : > { %v1919_v43 = vadd.f32 %v524_v18, %v520_v63  ;;  %v369_v28 = vmul.f32 1.442695, %v359_v16  ;;  %1353 = vpow2.f32 %v373_v17  ;;  %v1921_v0 = vadd.f32 %v524_v18, %v517_v30 }
  0x79   : > { %v1923_v1 = vadd.f32 %v524_v18, %v521_v59  ;;  %v377_v29 = vmul.f32 1.442695, %v363_v36  ;;  %1355 = vpow2.f32 %v367_v37  ;;  %v371_v5 = vmul.f32 1.442695, %v360_v35 }
  0x7a   : > { %v1925_v32 = vadd.f32 %v524_v18, %v518_v31  ;;  %v1927_v33 = vadd.f32 %v524_v18, %v519_v40  ;;  %1357 = vpow2.f32 %v375_v38  ;;  %v1929_v4 = vadd.f32 %v524_v18, %v522_v58 }
  0x7b   : > { %v1931_v3 = vadd.f32 %v524_v18, %v523_v41  ;;  %v533_v44 = vmax.f32 %v1917_v42, %v1919_v43  ;;  %1359 = vpow2.f32 %v369_v28  ;;  %v379_v39 = vmul.f32 1.442695, %v364_v34 }
  0x7c   : > { %v540_v45 = vmax.f32 %v1921_v0, %v1923_v1  ;;  %1361 = vpow2.f32 %v377_v29  ;;  %v547_v47 = vmax.f32 %v1925_v32, %v1929_v4  ;;  %v671_v40 = vstv %s1269_s19  ;;  %s1154_s19 = sshll.u32 %s215_s17, 4  ;;  %s2361_s19 = int_to_ptr.vmem [resolvable:$true] %s1154_s19 }
  0x7d   : > { %1363 = vpow2.f32 %v371_v5  ;;  %v534_v46 = vrot.slane %v533_v44, 4  ;;  %v554_v48 = vmax.f32 %v1927_v33, %v1931_v3  ;;  %s1517_s16 = scalar_lea.vmem %s2361_s19, 64 }
  0x7e   : > { %1365 = vpow2.f32 %v379_v39  ;;  %v541_v50 = vrot.slane %v540_v45, 4  ;;  %v548_v53 = vrot.slane %v547_v47, 4  ;;  %p1518_p3 = scmp.ne.s32.totalorder %s2361_s19, %s1517_s16 }
  0x7f   : > { %v535_v52 = vmax.f32 %v533_v44, %v534_v46  ;;  %v555_v56 = vrot.slane %v554_v48, 4 }
  0x80   : > { %v1352_v49 = vpop.eup %1351  ;;  %v542_v54 = vmax.f32 %v540_v45, %v541_v50  ;;  %v549_v63 = vmax.f32 %v547_v47, %v548_v53  ;;  %v672_v53 = vmul.f32 %v671_v40, %v1816_v20  ;;  %p1519_p9 = pnand %p1518_p3, %p2476_p8 }
  0x81   : > { %v409_v62 = vmul.f32 %v1352_v49, %v1781_v6  ;;  %v536_v30 = vrot.slane %v535_v52, 2  ;;  %v556_v16 = vmax.f32 %v554_v48, %v555_v56 }
  0x82   : > { %v1354_v51 = vpop.eup %1353  ;;  %v543_v59 = vrot.slane %v542_v54, 2  ;;  %v550_v28 = vrot.slane %v549_v63, 2  ;;  %p1520_p10 = pneg %p1519_p9 }
  0x83   : > { %v1356_v55 = vpop.eup %1355  ;;  %v381_v60 = vadd.f32 %v1354_v51, %v1352_v49  ;;  %v413_v57 = vmul.f32 %v1354_v51, %v1796_v11  ;;  %v537_v41 = vmax.f32 %v535_v52, %v536_v30  ;;  %v557_v29 = vrot.slane %v556_v16, 2 }
  0x84   : > { %v1358_v19 = vpop.eup %1357  ;;  %v410_v36 = vmul.f32 %v1356_v55, %v1784_v7  ;;  %v544_v45 = vmax.f32 %v542_v54, %v543_v59  ;;  %v1953_v52 = vmul.f32 %v671_v40, %v1819_v21  ;;  %v551_v56 = vmax.f32 %v549_v63, %v550_v28 }
  0x85   : > { %v1360_v61 = vpop.eup %1359  ;;  %v388_v17 = vadd.f32 %v1358_v19, %v1356_v55  ;;  %v382_v35 = vrot.slane %v381_v60, 4  ;;  %v414_v34 = vmul.f32 %v1358_v19, %v1799_v12  ;;  %v417_v38 = vadd.f32 %v413_v57, %v409_v62 }
  0x86   : > { %v1362_v15 = vpop.eup %1361  ;;  %v411_v58 = vmul.f32 %v1360_v61, %v1787_v8  ;;  %v558_v55 = vmax.f32 %v556_v16, %v557_v29  ;;  %v1958_v19 = vmul.f32 %v671_v40, %v1822_v22  ;;  %v680_v54 = vstv %s1943_s28 }
  0x87   : > { %v1364_v18 = vpop.eup %1363  ;;  %v395_v37 = vadd.f32 %v1362_v15, %v1360_v61  ;;  %v389_v5 = vrot.slane %v388_v17, 4  ;;  %v415_v39 = vmul.f32 %v1362_v15, %v1802_v13  ;;  %v383_v46 = vadd.f32 %v382_v35, %v381_v60 }
  0x88   : > { %v1366_v31 = vpop.eup %1365  ;;  %v412_v44 = vmul.f32 %v1364_v18, %v1793_v10  ;;  %v424_v49 = vadd.f32 %v414_v34, %v410_v36  ;;  %v418_v51 = vrot.slane %v417_v38, 4  ;;  %v538_v62 = vrot.slane %v537_v41, 1 }
  0x89   : > { %v402_v47 = vadd.f32 %v1366_v31, %v1364_v18  ;;  %v416_v48 = vmul.f32 %v1366_v31, %v1805_v14  ;;  %v396_v50 = vrot.slane %v395_v37, 4  ;;  %v390_v60 = vadd.f32 %v389_v5, %v388_v17 }
  0x8a   : > { %v431_v61 = vadd.f32 %v415_v39, %v411_v58  ;;  %v545_v57 = vrot.slane %v544_v45, 1  ;;  %v384_v15 = vrot.slane %v383_v46, 2  ;;  %v425_v59 = vrot.slane %v424_v49, 4 }
  0x8b   : > { %v403_v30 = vrot.slane %v402_v47, 4  ;;  %v438_v18 = vadd.f32 %v416_v48, %v412_v44  ;;  %v397_v35 = vadd.f32 %v396_v50, %v395_v37  ;;  %v419_v36 = vadd.f32 %v418_v51, %v417_v38 }
  0x8c   : > { %v675_v34 = vmul.f32 %v671_v40, %v1825_v23  ;;  %v676_v63 = vmul.f32 %v671_v40, %v1828_v24  ;;  %v552_v16 = vrot.slane %v551_v56, 1  ;;  %v559_v31 = vrot.slane %v558_v55, 1 }
  0x8d   : > { %v677_v28 = vmul.f32 %v671_v40, %v1831_v25  ;;  %v681_v29 = vmul.f32 %v680_v54, %v1790_v9  ;;  %v391_v17 = vrot.slane %v390_v60, 2  ;;  %v432_v58 = vrot.slane %v431_v61, 4 }
  0x8e   : > { %v539_v5 = vmax.f32 %v537_v41, %v538_v62  ;;  %v546_v39 = vmax.f32 %v544_v45, %v545_v57  ;;  %v1965_v22 = vadd.f32 %v384_v15, %v383_v46  ;;  %v1967_v44 = vadd.f32 %v403_v30, %v402_v47 }
  0x8f   : > { %v1969_v37 = vadd.f32 %v425_v59, %v424_v49  ;;  %v439_v38 = vrot.slane %v438_v18, 4  ;;  %v398_v48 = vrot.slane %v397_v35, 2  ;;  %v420_v50 = vrot.slane %v419_v36, 2 }
  0x90   : > { %v678_v51 = vmul.f32 %v671_v40, %v1834_v26  ;;  %v679_v25 = vmul.f32 %v671_v40, %v1837_v27  ;;  %v1973_v24 = vmax.f32 %v551_v56, %v552_v16  ;;  %v1975_v54 = vmax.f32 %v558_v55, %v559_v31 }
  0x91   : > { %v686_v41 = vrot.slane %v681_v29, %v1764_v2  ;;  %v711_v45 = vstv %s1955_s29  ;;  %v1979_v46 = vadd.f32 %v391_v17, %v390_v60  ;;  %v1981_v47 = vadd.f32 %v432_v58, %v431_v61  ;;  %v2443_v61 = vld [vmem:[#allocation12_spill] sm:$0xff] }
  0x92   : > { %v561_v49 = vsub.f32 %v1917_v42, %v539_v5  ;;  %v562_v62 = vsub.f32 %v1921_v0, %v546_v39  ;;  %v405_v15 = vrot.slane %v1967_v44, 2  ;;  %v427_v40 = vrot.slane %v1969_v37, 2 }
  0x93   : > { %v1988_v56 = vadd.f32 %v439_v38, %v438_v18  ;;  %v1990_v55 = vadd.f32 %v398_v48, %v397_v35  ;;  %v1992_v30 = vadd.f32 %v420_v50, %v419_v36  ;;  %v565_v60 = vsub.f32 %v1919_v43, %v539_v5  ;;  %v2444_v18 = vld [vmem:[#allocation13_spill] sm:$0xff]  ;;  %v2445_v43 = vld [vmem:[#allocation14_spill] sm:$0xff] }
  0x94   : > { %v690_v42 = vrot.slane %v681_v29, %v2443_v61  ;;  %v563_v0 = vsub.f32 %v1925_v32, %v1973_v24  ;;  %v564_v59 = vsub.f32 %v1927_v33, %v1975_v54  ;;  %v566_v16 = vsub.f32 %v1923_v1, %v546_v39 }
  0x95   : > { %v694_v31 = vrot.slane %v681_v29, %v2444_v18  ;;  %v567_v35 = vsub.f32 %v1929_v4, %v1973_v24  ;;  %v569_v36 = vmul.f32 1.442695, %v561_v49  ;;  %v571_v17 = vmul.f32 1.442695, %v562_v62 }
  0x96   : > { %v698_v58 = vrot.slane %v681_v29, %v2445_v43  ;;  %v703_v5 = vadd.f32 %v686_v41, %v672_v53  ;;  %v707_v38 = vadd.f32 %v686_v41, %v676_v63  ;;  %v712_v48 = vmul.f32 %v711_v45, %v1781_v6 }
  0x97   : > { %v716_v32 = vmul.f32 %v711_v45, %v1796_v11  ;;  %v704_v50 = vadd.f32 %v690_v42, %v1953_v52  ;;  %v708_v33 = vadd.f32 %v690_v42, %v677_v28  ;;  %v713_v1 = vmul.f32 %v711_v45, %v1784_v7 }
  0x98   : > { %v717_v39 = vmul.f32 %v711_v45, %v1799_v12  ;;  %v705_v24 = vadd.f32 %v694_v31, %v1958_v19  ;;  %v709_v4 = vadd.f32 %v694_v31, %v678_v51  ;;  %v714_v49 = vmul.f32 %v711_v45, %v1787_v8 }
  0x99   : > { %v718_v53 = vmul.f32 %v711_v45, %v1802_v13  ;;  %v577_v63 = vmul.f32 1.442695, %v565_v60  ;;  %v579_v29 = vmul.f32 1.442695, %v566_v16  ;;  %v706_v41 = vadd.f32 %v698_v58, %v675_v34 }
  0x9a   : > { %v710_v62 = vadd.f32 %v698_v58, %v679_v25  ;;  %v715_v57 = vmul.f32 %v711_v45, %v1793_v10  ;;  %v719_v52 = vmul.f32 %v711_v45, %v1805_v14  ;;  %v720_v28 = vadd.f32 %v712_v48, %v703_v5 }
  0x9b   : > { %v724_v42 = vadd.f32 %v716_v32, %v707_v38  ;;  %1367 = vpow2.f32 %v569_v36  ;;  %v721_v43 = vadd.f32 %v713_v1, %v704_v50  ;;  %v725_v27 = vadd.f32 %v717_v39, %v708_v33 }
  0x9c   : > { %v728_v26 = vstv %s1995_s26  ;;  %v568_v19 = vsub.f32 %v1931_v3, %v1975_v54  ;;  %1369 = vpow2.f32 %v571_v17  ;;  %v722_v51 = vadd.f32 %v714_v49, %v705_v24  ;;  %s2359_s26 = scalar_lea.hbm %s2406_s3, %s1290_s10 }
  0x9d   : > { %v726_v31 = vadd.f32 %v718_v53, %v709_v4  ;;  %v434_v60 = vrot.slane %v1981_v47, 2  ;;  %v573_v34 = vmul.f32 1.442695, %v563_v0  ;;  %v575_v25 = vmul.f32 1.442695, %v564_v59 }
  0x9e   : > { %1371 = vpow2.f32 %v577_v63  ;;  %v723_v16 = vadd.f32 %v715_v57, %v706_v41  ;;  %v727_v58 = vadd.f32 %v719_v52, %v710_v62  ;;  %v2021_v45 = vadd.f32 %v728_v26, %v720_v28 }
  0x9f   : > { %v2023_v5 = vadd.f32 %v728_v26, %v724_v42  ;;  %1373 = vpow2.f32 %v579_v29  ;;  %v581_v36 = vmul.f32 1.442695, %v567_v35  ;;  %v2027_v38 = vadd.f32 %v728_v26, %v721_v43 }
  0xa0   : > { %v2029_v3 = vadd.f32 %v728_v26, %v725_v27  ;;  %v393_v54 = vrot.slane %v1979_v46, 1  ;;  %v583_v0 = vmul.f32 1.442695, %v568_v19  ;;  %v2034_v59 = vadd.f32 %v728_v26, %v722_v51 }
  0xa1   : > { %v2036_v57 = vadd.f32 %v728_v26, %v726_v31  ;;  %v406_v17 = vadd.f32 %v405_v15, %v1967_v44  ;;  %v428_v48 = vadd.f32 %v427_v40, %v1969_v37  ;;  %v441_v32 = vrot.slane %v1988_v56, 2 }
  0xa2   : > { %1375 = vpow2.f32 %v573_v34  ;;  %v2041_v35 = vadd.f32 %v728_v26, %v723_v16  ;;  %v2043_v27 = vadd.f32 %v728_v26, %v727_v58  ;;  %v737_v43 = vmax.f32 %v2021_v45, %v2023_v5 }
  0xa3   : > { %1377 = vpow2.f32 %v575_v25  ;;  %v435_v50 = vadd.f32 %v434_v60, %v1981_v47  ;;  %v744_v33 = vmax.f32 %v2027_v38, %v2029_v3  ;;  %v400_v44 = vrot.slane %v1990_v55, 1 }
  0xa4   : > { %1379 = vpow2.f32 %v581_v36  ;;  %v751_v37 = vmax.f32 %v2034_v59, %v2036_v57  ;;  %v2446_v26 = vrot.slane %v1965_v22, 1  ;;  %v407_v1 = vrot.slane %v406_v17, 1 }
  0xa5   : > { %1381 = vpow2.f32 %v583_v0  ;;  %v1368_v15 = vpop.eup %1367  ;;  %v422_v47 = vrot.slane %v1992_v30, 1  ;;  %v429_v39 = vrot.slane %v428_v48, 1  ;;  %v394_v4 = vadd.f32 %v393_v54, %v1979_v46 }
  0xa6   : > { %v387_v40 = vadd.f32 %v2446_v26, %v1965_v22  ;;  %v1370_v24 = vpop.eup %1369  ;;  %v442_v49 = vadd.f32 %v441_v32, %v1988_v56  ;;  %v738_v53 = vrot.slane %v737_v43, 4  ;;  %v758_v63 = vmax.f32 %v2041_v35, %v2043_v27 }
  0xa7   : > { %v436_v41 = vrot.slane %v435_v50, 1  ;;  %v745_v62 = vrot.slane %v744_v33, 4  ;;  %v401_v52 = vadd.f32 %v400_v44, %v1990_v55  ;;  %v2063_v28 = vstv %s2025_s5  ;;  %s1140_s5 = scalar_lea.sflag [#allocation4], %s1746_s27 }
  0xa8   : > { %v1372_v29 = vpop.eup %1371  ;;  %v2066_v22 = vstv %s2032_s11  ;;  %v752_v42 = vrot.slane %v751_v37, 4  ;;  %v408_v51 = vadd.f32 %v407_v1, %v406_v17  ;;  %v423_v46 = vadd.f32 %v422_v47, %v1992_v30  ;;  %s1594_s11 = smov [#allocation7]  }
  0xa9   : > { %2447 = vst [vmem:[#allocation12_spill] sm:$0xff] %v2066_v22  ;;  %v1374_v19 = vpop.eup %1373  ;;  %v430_v31 = vadd.f32 %v429_v39, %v428_v48  ;;  %1383 = vrcp.f32 %v387_v40  ;;  %v443_v56 = vrot.slane %v442_v49, 1  ;;  %v739_v60 = vmax.f32 %v737_v43, %v738_v53 }
  0xaa   : > { %1385 = vrcp.f32 %v394_v4  ;;  %v759_v34 = vrot.slane %v758_v63, 4  ;;  %v437_v16 = vadd.f32 %v436_v41, %v435_v50  ;;  %v585_v58 = vadd.f32 %v1372_v29, %v1368_v15 }
  0xab   : > { %v613_v55 = vmul.f32 %v1368_v15, %v1781_v6  ;;  %v746_v36 = vmax.f32 %v744_v33, %v745_v62  ;;  %v592_v0 = vadd.f32 %v1374_v19, %v1370_v24  ;;  %v617_v17 = vmul.f32 %v1372_v29, %v1796_v11 }
  0xac   : > { %v1376_v25 = vpop.eup %1375  ;;  %v740_v32 = vrot.slane %v739_v60, 2  ;;  %v753_v30 = vmax.f32 %v751_v37, %v752_v42  ;;  %v2074_v44 = vmul.f32 %v2063_v28, %v423_v46  ;;  %v614_v43 = vmul.f32 %v1370_v24, %v1784_v7 }
  0xad   : > { %v1378_v54 = vpop.eup %1377  ;;  %v618_v50 = vmul.f32 %v1374_v19, %v1799_v12  ;;  %v747_v26 = vrot.slane %v746_v36, 2  ;;  %v2080_v15 = vadd.f32 %v443_v56, %v442_v49  ;;  %1387 = vrcp.f32 %v401_v52 }
  0xae   : > { %v1380_v48 = vpop.eup %1379  ;;  %v754_v40 = vrot.slane %v753_v30, 2  ;;  %v760_v1 = vmax.f32 %v758_v63, %v759_v34  ;;  %v586_v47 = vrot.slane %v585_v58, 4  ;;  %v615_v37 = vmul.f32 %v1376_v25, %v1787_v8 }
  0xaf   : > { %v1382_v33 = vpop.eup %1381  ;;  %v741_v39 = vmax.f32 %v739_v60, %v740_v32  ;;  %v748_v4 = vmax.f32 %v746_v36, %v747_v26  ;;  %v593_v53 = vrot.slane %v592_v0, 4  ;;  %v599_v29 = vadd.f32 %v1380_v48, %v1376_v25 }
  0xb0   : > { %v619_v24 = vmul.f32 %v1380_v48, %v1802_v13  ;;  %v621_v41 = vadd.f32 %v617_v17, %v613_v55  ;;  %v606_v62 = vadd.f32 %v1382_v33, %v1378_v54  ;;  %v616_v42 = vmul.f32 %v1378_v54, %v1793_v10 }
  0xb1   : > { %v620_v49 = vmul.f32 %v1382_v33, %v1805_v14  ;;  %v628_v19 = vadd.f32 %v618_v50, %v614_v43  ;;  %v2087_v52 = vmul.f32 %v2063_v28, %v430_v31  ;;  %1389 = vrcp.f32 %v408_v51 }
  0xb2   : > { %v755_v63 = vmax.f32 %v753_v30, %v754_v40  ;;  %v761_v46 = vrot.slane %v760_v1, 2  ;;  %v2091_v60 = vadd.f32 %v586_v47, %v585_v58  ;;  %v742_v34 = vrot.slane %v741_v39, 1 }
  0xb3   : > { %v2089_v56 = vpop.eup %1383  ;;  %v749_v25 = vrot.slane %v748_v4, 1  ;;  %v875_v55 = vstv %s2070_s23  ;;  %v2098_v54 = vadd.f32 %v593_v53, %v592_v0  ;;  %v600_v17 = vrot.slane %v599_v29, 4 }
  0xb4   : > { %v2096_v36 = vpop.eup %1385  ;;  %v622_v31 = vrot.slane %v621_v41, 4  ;;  %v2100_v32 = vadd.f32 %v619_v24, %v615_v37  ;;  %v607_v51 = vrot.slane %v606_v62, 4  ;;  %v629_v30 = vrot.slane %v628_v19, 4 }
  0xb5   : > { %v2102_v48 = vadd.f32 %v620_v49, %v616_v42  ;;  %v884_v43 = vstv %s2078_s20  ;;  %v2106_v58 = vmul.f32 %v2063_v28, %v437_v16  ;;  %v756_v50 = vrot.slane %v755_v63, 1 }
  0xb6   : > { %v762_v26 = vmax.f32 %v760_v1, %v761_v46  ;;  %v876_v33 = vmul.f32 %v875_v55, %v1816_v20  ;;  %v743_v40 = vmax.f32 %v741_v39, %v742_v34  ;;  %v750_v47 = vmax.f32 %v748_v4, %v749_v25  ;;  %v2450_v34 = vld [vmem:[#allocation15_spill] sm:$0xff] }
  0xb7   : > { %2448 = vst [vmem:[#allocation13_spill] sm:$0xff] %v2106_v58  ;;  %v877_v37 = vmul.f32 %v875_v55, %v1819_v21  ;;  %v2113_v53 = vpop.eup %1387  ;;  %v2115_v24 = vadd.f32 %v600_v17, %v599_v29  ;;  %v2117_v42 = vadd.f32 %v622_v31, %v621_v41  ;;  %v885_v1 = vmul.f32 %v884_v43, %v1790_v9  ;;  %v2451_v9 = vld [vmem:[#allocation16_spill] sm:$0xff]  ;;  %v2455_v39 = vld [vmem:[#allocation19_spill] sm:$0xff] }
  0xb8   : > { %2449 = vst [vmem:[#allocation20_spill] sm:$0xff] %v2113_v53  ;;  %v2122_v20 = vadd.f32 %v607_v51, %v606_v62  ;;  %v2124_v46 = vadd.f32 %v629_v30, %v628_v19  ;;  %v757_v21 = vmax.f32 %v755_v63, %v756_v50  ;;  %v763_v4 = vrot.slane %v762_v26, 1  ;;  %v2453_v50 = vld [vmem:[#allocation17_spill] sm:$0xff] }
  0xb9   : > { %v878_v25 = vmul.f32 %v875_v55, %v2450_v34  ;;  %v879_v29 = vmul.f32 %v875_v55, %v1825_v23  ;;  %v765_v41 = vsub.f32 %v2021_v45, %v743_v40  ;;  %v766_v17 = vsub.f32 %v2027_v38, %v750_v47  ;;  %v2454_v34 = vld [vmem:[#allocation18_spill] sm:$0xff] }
  0xba   : > { %v880_v31 = vmul.f32 %v875_v55, %v2451_v9  ;;  %v915_v43 = vstv %s2093_s22  ;;  %v769_v19 = vsub.f32 %v2023_v5, %v743_v40  ;;  %v890_v51 = vrot.slane %v885_v1, %v1764_v2  ;;  %v2456_v38 = vld [vmem:[#allocation14_spill] sm:$0xff] }
  0xbb   : > { %v2133_v62 = vpop.eup %1389  ;;  %v894_v63 = vrot.slane %v885_v1, %v2443_v61  ;;  %v898_v30 = vrot.slane %v885_v1, %v2444_v18  ;;  %v881_v23 = vmul.f32 %v875_v55, %v2453_v50  ;;  %v882_v45 = vmul.f32 %v875_v55, %v2454_v34 }
  0xbc   : > { %2452 = vst [vmem:[#allocation15_spill] sm:$0xff] %v2133_v62  ;;  %v883_v16 = vmul.f32 %v875_v55, %v2455_v39  ;;  %v902_v49 = vrot.slane %v885_v1, %v2456_v38  ;;  %v764_v9 = vmax.f32 %v762_v26, %v763_v4  ;;  %v767_v0 = vsub.f32 %v2034_v59, %v757_v21 }
  0xbd   : > { %v916_v22 = vmul.f32 %v915_v43, %v1781_v6  ;;  %v932_v5 = vstv %s2108_s7  ;;  %v770_v2 = vsub.f32 %v2029_v3, %v750_v47  ;;  %v771_v61 = vsub.f32 %v2036_v57, %v757_v21 }
  0xbe   : > { %v773_v40 = vmul.f32 1.442695, %v765_v41  ;;  %v775_v18 = vmul.f32 1.442695, %v766_v17  ;;  %v781_v62 = vmul.f32 1.442695, %v769_v19  ;;  %v907_v50 = vadd.f32 %v890_v51, %v876_v33 }
  0xbf   : > { %v908_v53 = vadd.f32 %v894_v63, %v877_v37  ;;  %v909_v34 = vadd.f32 %v898_v30, %v878_v25  ;;  %v910_v58 = vadd.f32 %v902_v49, %v879_v29  ;;  %v911_v55 = vadd.f32 %v890_v51, %v880_v31 }
  0xc0   : > { %v912_v39 = vadd.f32 %v894_v63, %v881_v23  ;;  %v920_v26 = vmul.f32 %v915_v43, %v1796_v11  ;;  %v913_v1 = vadd.f32 %v898_v30, %v882_v45  ;;  %v914_v59 = vadd.f32 %v902_v49, %v883_v16 }
  0xc1   : > { %v917_v6 = vmul.f32 %v915_v43, %v1784_v7  ;;  %v921_v4 = vmul.f32 %v915_v43, %v1799_v12  ;;  %v918_v3 = vmul.f32 %v915_v43, %v1787_v8  ;;  %v919_v57 = vmul.f32 %v915_v43, %v1793_v10 }
  0xc2   : > { %v922_v47 = vmul.f32 %v915_v43, %v1802_v13  ;;  %v923_v33 = vmul.f32 %v915_v43, %v1805_v14  ;;  %v768_v37 = vsub.f32 %v2041_v35, %v764_v9  ;;  %v772_v21 = vsub.f32 %v2043_v27, %v764_v9 }
  0xc3   : > { %1391 = vpow2.f32 %v773_v40  ;;  %v783_v11 = vmul.f32 1.442695, %v770_v2  ;;  %v777_v16 = vmul.f32 1.442695, %v767_v0  ;;  %v924_v49 = vadd.f32 %v916_v22, %v907_v50 }
  0xc4   : > { %1393 = vpow2.f32 %v775_v18  ;;  %v928_v7 = vadd.f32 %v920_v26, %v911_v55  ;;  %v785_v12 = vmul.f32 1.442695, %v771_v61  ;;  %v925_v25 = vadd.f32 %v917_v6, %v908_v53  ;;  %v2462_v26 = vld [vmem:[#allocation13_spill] sm:$0xff]  ;;  %v2465_v6 = vld [vmem:[#allocation15_spill] sm:$0xff] }
  0xc5   : > { %1395 = vpow2.f32 %v781_v62  ;;  %v929_v8 = vadd.f32 %v921_v4, %v912_v39  ;;  %v926_v29 = vadd.f32 %v918_v3, %v909_v34  ;;  %v927_v10 = vadd.f32 %v919_v57, %v910_v58 }
  0xc6   : > { %v930_v41 = vadd.f32 %v922_v47, %v913_v1  ;;  %v931_v13 = vadd.f32 %v923_v33, %v914_v59  ;;  %v2457_v14 = vrot.slane %v2091_v60, 2  ;;  %v602_v27 = vrot.slane %v2115_v24, 2  ;;  %v2463_v1 = vld [vmem:[#allocation20_spill] sm:$0xff] }
  0xc7   : > { %v779_v17 = vmul.f32 1.442695, %v768_v37  ;;  %1397 = vpow2.f32 %v783_v11  ;;  %v787_v0 = vmul.f32 1.442695, %v772_v21  ;;  %v2161_v22 = vadd.f32 %v932_v5, %v924_v49 }
  0xc8   : > { %v589_v35 = vadd.f32 %v2457_v14, %v2091_v60  ;;  %1399 = vpow2.f32 %v777_v16  ;;  %v2163_v31 = vadd.f32 %v932_v5, %v928_v7  ;;  %v624_v53 = vrot.slane %v2117_v42, 2 }
  0xc9   : > { %1401 = vpow2.f32 %v785_v12  ;;  %v2166_v58 = vadd.f32 %v932_v5, %v925_v25  ;;  %v2168_v43 = vadd.f32 %v932_v5, %v929_v8  ;;  %v2170_v62 = vadd.f32 %v932_v5, %v926_v29  ;;  %v2230_v25 = vld [vmem:[%s1750_s30] sm:$0xff] }
  0xca   : > { %v2172_v60 = vadd.f32 %v932_v5, %v927_v10  ;;  %v2174_v19 = vadd.f32 %v932_v5, %v930_v41  ;;  %v2176_v51 = vadd.f32 %v932_v5, %v931_v13  ;;  %v449_v63 = vmul.f32 %v2063_v28, %v2080_v15  ;;  %v2234_v29 = vld [vmem:[%s1750_s30 + $0x20] sm:$0xff] }
  0xcb   : > { %v2458_v30 = vrot.slane %v2098_v54, 2  ;;  %v2459_v45 = vrot.slane %v2100_v32, 4  ;;  %1403 = vpow2.f32 %v779_v17  ;;  %v609_v9 = vrot.slane %v2122_v20, 2 }
  0xcc   : > { %v631_v2 = vrot.slane %v2124_v46, 2  ;;  %1405 = vpow2.f32 %v787_v0  ;;  %v941_v5 = vmax.f32 %v2161_v22, %v2163_v31  ;;  %v590_v40 = vrot.slane %v589_v35, 1  ;;  %v2242_v0 = vld [vmem:[%s1750_s30 + $0x8] sm:$0xff] }
  0xcd   : > { %v596_v23 = vadd.f32 %v2458_v30, %v2098_v54  ;;  %v637_v38 = vadd.f32 %v2459_v45, %v2100_v32  ;;  %v1392_v61 = vpop.eup %1391  ;;  %v603_v28 = vadd.f32 %v602_v27, %v2115_v24  ;;  %v2460_v15 = vrot.slane %v2102_v48, 4 }
  0xce   : > { %v948_v32 = vmax.f32 %v2166_v58, %v2168_v43  ;;  %v1394_v18 = vpop.eup %1393  ;;  %v2198_v50 = vmul.f32 %v2089_v56, %v2074_v44  ;;  %v2201_v34 = vadd.f32 %v624_v53, %v2117_v42  ;;  %v955_v55 = vmax.f32 %v2170_v62, %v2174_v19 }
  0xcf   : > { %v644_v54 = vadd.f32 %v2460_v15, %v2102_v48  ;;  %v962_v24 = vmax.f32 %v2172_v60, %v2176_v51  ;;  %v1396_v39 = vpop.eup %1395  ;;  %v2209_v48 = vmul.f32 %v2096_v36, %v2087_v52  ;;  %v2213_v59 = vmul.f32 %v2463_v1, %v2462_v26 }
  0xd0   : > { %v597_v44 = vrot.slane %v596_v23, 1  ;;  %v638_v56 = vrot.slane %v637_v38, 2  ;;  %v2216_v42 = vmul.f32 %v2465_v6, %v449_v63  ;;  %v2219_v4 = vadd.f32 %v609_v9, %v2122_v20  ;;  %v2246_v63 = vld [vmem:[%s1750_s30 + $0x28] sm:$0xff] }
  0xd1   : > { %2461 = vst [vmem:[#allocation16_spill] sm:$0xff] %v2209_v48  ;;  %2464 = vst [vmem:[#allocation17_spill] sm:$0xff] %v2213_v59  ;;  %v2222_v3 = vadd.f32 %v631_v2, %v2124_v46  ;;  %v942_v57 = vrot.slane %v941_v5, 4  ;;  %v1398_v52 = vpop.eup %1397  ;;  %v591_v36 = vadd.f32 %v590_v40, %v589_v35  ;;  %v604_v47 = vrot.slane %v603_v28, 1  ;;  %v2252_v40 = vld [vmem:[%s1750_s30 + $0x10] sm:$0xff] }
  0xd2   : > { %2466 = vst [vmem:[#allocation18_spill] sm:$0xff] %v2216_v42  ;;  %v645_v33 = vrot.slane %v644_v54, 2  ;;  %v949_v37 = vrot.slane %v948_v32, 4  ;;  %v1400_v21 = vpop.eup %1399  ;;  %v789_v16 = vadd.f32 %v1396_v39, %v1392_v61  ;;  %v956_v49 = vrot.slane %v955_v55, 4 }
  0xd3   : > { %v963_v7 = vrot.slane %v962_v24, 4  ;;  %v1402_v20 = vpop.eup %1401  ;;  %v2225_v12 = vadd.f32 %v597_v44, %v596_v23  ;;  %v2227_v46 = vadd.f32 %v638_v56, %v637_v38  ;;  %v817_v8 = vmul.f32 %v2230_v25, %v1392_v61 }
  0xd4   : > { %v821_v10 = vmul.f32 %v2234_v29, %v1396_v39  ;;  %v796_v14 = vadd.f32 %v1398_v52, %v1394_v18  ;;  %v943_v35 = vmax.f32 %v941_v5, %v942_v57  ;;  %v2239_v17 = vadd.f32 %v645_v33, %v644_v54  ;;  %v2256_v54 = vld [vmem:[%s1750_s30 + $0x30] sm:$0xff] }
  0xd5   : > { %v1404_v27 = vpop.eup %1403  ;;  %v818_v53 = vmul.f32 %v2242_v0, %v1394_v18  ;;  %v822_v30 = vmul.f32 %v2246_v63, %v1398_v52  ;;  %v950_v23 = vmax.f32 %v948_v32, %v949_v37  ;;  %v2249_v38 = vadd.f32 %v604_v47, %v603_v28  ;;  %v2260_v32 = vld [vmem:[%s1750_s30 + $0x18] sm:$0xff] }
  0xd6   : > { %v1406_v45 = vpop.eup %1405  ;;  %v790_v9 = vrot.slane %v789_v16, 4  ;;  %v957_v2 = vmax.f32 %v955_v55, %v956_v49  ;;  %v964_v5 = vmax.f32 %v962_v24, %v963_v7  ;;  %v803_v61 = vadd.f32 %v1402_v20, %v1400_v21  ;;  %v2264_v55 = vld [vmem:[%s1750_s30 + $0x38] sm:$0xff]  ;;  %s2280_s30 = sld [smem:[#allocation2 + $0x202]] }
  0xd7   : > { %v819_v15 = vmul.f32 %v2252_v40, %v1400_v21  ;;  %v823_v18 = vmul.f32 %v2256_v54, %v1402_v20  ;;  %v825_v39 = vadd.f32 %v821_v10, %v817_v8  ;;  %1407 = vrcp.f32 %v591_v36 }
  0xd8   : > { %v797_v26 = vrot.slane %v796_v14, 4  ;;  %v820_v28 = vmul.f32 %v2260_v32, %v1404_v27  ;;  %v944_v1 = vrot.slane %v943_v35, 2  ;;  %v810_v44 = vadd.f32 %v1406_v45, %v1404_v27 }
  0xd9   : > { %v824_v24 = vmul.f32 %v2264_v55, %v1406_v45  ;;  %v832_v56 = vadd.f32 %v822_v30, %v818_v53  ;;  %v951_v6 = vrot.slane %v950_v23, 2  ;;  %v791_v57 = vadd.f32 %v790_v9, %v789_v16 }
  0xda   : > { %v945_v52 = vmax.f32 %v943_v35, %v944_v1  ;;  %v958_v47 = vrot.slane %v957_v2, 2  ;;  %v965_v33 = vrot.slane %v964_v5, 2  ;;  %v804_v37 = vrot.slane %v803_v61, 4 }
  0xdb   : > { %v826_v21 = vrot.slane %v825_v39, 4  ;;  %v839_v36 = vadd.f32 %v823_v18, %v819_v15  ;;  %v952_v49 = vmax.f32 %v950_v23, %v951_v6  ;;  %v798_v7 = vadd.f32 %v797_v26, %v796_v14 }
  0xdc   : > { %v946_v20 = vrot.slane %v945_v52, 1  ;;  %v959_v8 = vmax.f32 %v957_v2, %v958_v47  ;;  %v966_v10 = vmax.f32 %v964_v5, %v965_v33  ;;  %v811_v13 = vrot.slane %v810_v44, 4 }
  0xdd   : > { %v833_v27 = vrot.slane %v832_v56, 4  ;;  %v846_v41 = vadd.f32 %v824_v24, %v820_v28  ;;  %v953_v11 = vrot.slane %v952_v49, 1  ;;  %v792_v42 = vrot.slane %v791_v57, 2 }
  0xde   : > { %v947_v45 = vmax.f32 %v945_v52, %v946_v20  ;;  %v960_v53 = vrot.slane %v959_v8, 1  ;;  %v967_v30 = vrot.slane %v966_v10, 1  ;;  %v805_v16 = vadd.f32 %v804_v37, %v803_v61 }
  0xdf   : > { %v827_v35 = vadd.f32 %v826_v21, %v825_v39  ;;  %v840_v9 = vrot.slane %v839_v36, 4  ;;  %v954_v1 = vmax.f32 %v952_v49, %v953_v11  ;;  %v799_v59 = vrot.slane %v798_v7, 2 }
  0xe0   : > { %v961_v48 = vmax.f32 %v959_v8, %v960_v53  ;;  %v968_v15 = vmax.f32 %v966_v10, %v967_v30  ;;  %v969_v14 = vsub.f32 %v2161_v22, %v947_v45  ;;  %v812_v23 = vadd.f32 %v811_v13, %v810_v44 }
  0xe1   : > { %v834_v2 = vadd.f32 %v833_v27, %v832_v56  ;;  %v970_v5 = vsub.f32 %v2166_v58, %v954_v1  ;;  %v973_v18 = vsub.f32 %v2163_v31, %v947_v45  ;;  %v2270_v26 = vpop.eup %1407  ;;  %v847_v28 = vrot.slane %v846_v41, 4 }
  0xe2   : > { %v971_v24 = vsub.f32 %v2170_v62, %v961_v48  ;;  %v972_v61 = vsub.f32 %v2172_v60, %v968_v15  ;;  %v974_v11 = vsub.f32 %v2168_v43, %v954_v1  ;;  %v793_v39 = vadd.f32 %v792_v42, %v791_v57  ;;  %v2470_v1 = vld [vmem:[#allocation12_spill] sm:$0xff] }
  0xe3   : > { %v806_v6 = vrot.slane %v805_v16, 2  ;;  %v975_v52 = vsub.f32 %v2174_v19, %v961_v48  ;;  %v977_v22 = vmul.f32 1.442695, %v969_v14  ;;  %v828_v13 = vrot.slane %v827_v35, 2 }
  0xe4   : > { %v976_v44 = vsub.f32 %v2176_v51, %v968_v15  ;;  %v979_v58 = vmul.f32 1.442695, %v970_v5  ;;  %v981_v56 = vmul.f32 1.442695, %v971_v24  ;;  %v813_v31 = vrot.slane %v812_v23, 2 }
  0xe5   : > { %1409 = vpow2.f32 %v977_v22  ;;  %v983_v47 = vmul.f32 1.442695, %v972_v61  ;;  %v985_v33 = vmul.f32 1.442695, %v973_v18  ;;  %v800_v37 = vadd.f32 %v799_v59, %v798_v7 }
  0xe6   : > { %v841_v62 = vadd.f32 %v840_v9, %v839_v36  ;;  %1411 = vpow2.f32 %v979_v58  ;;  %v987_v60 = vmul.f32 1.442695, %v974_v11  ;;  %v835_v21 = vrot.slane %v834_v2, 2 }
  0xe7   : > { %v848_v43 = vadd.f32 %v847_v28, %v846_v41  ;;  %1413 = vpow2.f32 %v981_v56  ;;  %v989_v42 = vmul.f32 1.442695, %v975_v52  ;;  %v2467_v19 = vrot.slane %v2201_v34, 1 }
  0xe8   : > { %v807_v51 = vadd.f32 %v806_v6, %v805_v16  ;;  %1415 = vpow2.f32 %v983_v47  ;;  %v991_v57 = vmul.f32 1.442695, %v976_v44  ;;  %v640_v49 = vrot.slane %v2227_v46, 1 }
  0xe9   : > { %v627_v48 = vadd.f32 %v2467_v19, %v2201_v34  ;;  %v647_v59 = vrot.slane %v2239_v17, 1  ;;  %v814_v36 = vadd.f32 %v813_v31, %v812_v23  ;;  %1417 = vpow2.f32 %v985_v33 }
  0xea   : > { %v794_v7 = vrot.slane %v793_v39, 1  ;;  %v829_v20 = vadd.f32 %v828_v13, %v827_v35  ;;  %v842_v41 = vrot.slane %v841_v62, 2  ;;  %1419 = vpow2.f32 %v987_v60 }
  0xeb   : > { %v801_v8 = vrot.slane %v800_v37, 1  ;;  %v836_v10 = vadd.f32 %v835_v21, %v834_v2  ;;  %v849_v27 = vrot.slane %v848_v43, 2  ;;  %1421 = vpow2.f32 %v989_v42 }
  0xec   : > { %v2468_v34 = vrot.slane %v2219_v4, 1  ;;  %v2469_v53 = vrot.slane %v2222_v3, 1  ;;  %v808_v16 = vrot.slane %v807_v51, 1  ;;  %1423 = vpow2.f32 %v991_v57 }
  0xed   : > { %v641_v9 = vadd.f32 %v640_v49, %v2227_v46  ;;  %v648_v35 = vadd.f32 %v647_v59, %v2239_v17  ;;  %v650_v15 = vmul.f32 %v2470_v1, %v627_v48  ;;  %v815_v14 = vrot.slane %v814_v36, 1 }
  0xee   : > { %v612_v45 = vadd.f32 %v2468_v34, %v2219_v4  ;;  %v634_v30 = vadd.f32 %v2469_v53, %v2222_v3  ;;  %1425 = vrcp.f32 %v2225_v12  ;;  %v795_v23 = vadd.f32 %v794_v7, %v793_v39 }
  0xef   : > { %v830_v2 = vrot.slane %v829_v20, 1  ;;  %v2294_v5 = vadd.f32 %v842_v41, %v841_v62  ;;  %v1410_v4 = vpop.eup %1409  ;;  %1427 = vrcp.f32 %v2249_v38  ;;  %v802_v3 = vadd.f32 %v801_v8, %v800_v37 }
  0xf0   : > { %v837_v18 = vrot.slane %v836_v10, 1  ;;  %v2297_v28 = vadd.f32 %v849_v27, %v848_v43  ;;  %v1412_v46 = vpop.eup %1411  ;;  %v2300_v17 = vmul.f32 %v2470_v1, %v634_v30  ;;  %1429 = vrcp.f32 %v612_v45 }
  0xf1   : > { %v809_v24 = vadd.f32 %v808_v16, %v807_v51  ;;  %v2303_v61 = vstv %s2280_s30  ;;  %v1414_v12 = vpop.eup %1413  ;;  %v2306_v11 = vmul.f32 %v2470_v1, %v641_v9  ;;  %v2309_v39 = vmul.f32 %v2470_v1, %v648_v35 }
  0xf2   : > { %v2312_v38 = vmul.f32 %v2270_v26, %v650_v15  ;;  %v816_v6 = vadd.f32 %v815_v14, %v814_v36  ;;  %v1416_v52 = vpop.eup %1415  ;;  %v2314_v22 = vadd.f32 %v830_v2, %v829_v20  ;;  %v844_v13 = vrot.slane %v2294_v5, 1 }
  0xf3   : > { %1431 = vrcp.f32 %v795_v23  ;;  %v1021_v44 = vmul.f32 %v2230_v25, %v1410_v4  ;;  %v1418_v58 = vpop.eup %1417  ;;  %v2318_v56 = vadd.f32 %v837_v18, %v836_v10  ;;  %v851_v31 = vrot.slane %v2297_v28, 1 }
  0xf4   : > { %1433 = vrcp.f32 %v802_v3  ;;  %v1022_v47 = vmul.f32 %v2242_v0, %v1412_v46  ;;  %v1420_v33 = vpop.eup %1419  ;;  %v993_v26 = vadd.f32 %v1418_v58, %v1410_v4  ;;  %v1023_v37 = vmul.f32 %v2252_v40, %v1414_v12 }
  0xf5   : > { %1435 = vrcp.f32 %v809_v24  ;;  %v1025_v62 = vmul.f32 %v2234_v29, %v1418_v58  ;;  %v1422_v60 = vpop.eup %1421  ;;  %v1000_v21 = vadd.f32 %v1420_v33, %v1412_v46  ;;  %v1024_v25 = vmul.f32 %v2260_v32, %v1416_v52 }
  0xf6   : > { %1437 = vrcp.f32 %v816_v6  ;;  %v1026_v43 = vmul.f32 %v2246_v63, %v1420_v33  ;;  %v1424_v42 = vpop.eup %1423  ;;  %v994_v19 = vrot.slane %v993_v26, 4  ;;  %v1007_v48 = vadd.f32 %v1422_v60, %v1414_v12 }
  0xf7   : > { %v1027_v51 = vmul.f32 %v2256_v54, %v1422_v60  ;;  %v1029_v0 = vadd.f32 %v1025_v62, %v1021_v44  ;;  %v1001_v57 = vrot.slane %v1000_v21, 4  ;;  %v1014_v49 = vadd.f32 %v1424_v42, %v1416_v52 }
  0xf8   : > { %v1028_v59 = vmul.f32 %v2264_v55, %v1424_v42  ;;  %v1036_v40 = vadd.f32 %v1026_v43, %v1022_v47  ;;  %v1426_v36 = vpop.eup %1425  ;;  %v995_v29 = vadd.f32 %v994_v19, %v993_v26  ;;  %v1008_v7 = vrot.slane %v1007_v48, 4 }
  0xf9   : > { %v1030_v20 = vrot.slane %v1029_v0, 4  ;;  %v1043_v41 = vadd.f32 %v1027_v51, %v1023_v37  ;;  %v1428_v8 = vpop.eup %1427  ;;  %v1002_v32 = vadd.f32 %v1001_v57, %v1000_v21  ;;  %v1015_v10 = vrot.slane %v1014_v49, 4 }
  0xfa   : > { %v1037_v63 = vrot.slane %v1036_v40, 4  ;;  %v1050_v27 = vadd.f32 %v1028_v59, %v1024_v25  ;;  %v1430_v34 = vpop.eup %1429  ;;  %v996_v45 = vrot.slane %v995_v29, 2  ;;  %v1009_v53 = vadd.f32 %v1008_v7, %v1007_v48 }
  0xfb   : > { %v1031_v54 = vadd.f32 %v1030_v20, %v1029_v0  ;;  %v1044_v30 = vrot.slane %v1043_v41, 4  ;;  %v1003_v16 = vrot.slane %v1002_v32, 2  ;;  %v1016_v9 = vadd.f32 %v1015_v10, %v1014_v49 }
  0xfc   : > { %v1038_v35 = vadd.f32 %v1037_v63, %v1036_v40  ;;  %v1051_v55 = vrot.slane %v1050_v27, 4  ;;  %v997_v15 = vadd.f32 %v996_v45, %v995_v29  ;;  %v1010_v14 = vrot.slane %v1009_v53, 2  ;;  %v2471_v63 = vld [vmem:[#allocation16_spill] sm:$0xff] }
  0xfd   : > { %v1432_v1 = vpop.eup %1431  ;;  %v1032_v23 = vrot.slane %v1031_v54, 2  ;;  %v1045_v2 = vadd.f32 %v1044_v30, %v1043_v41  ;;  %v1004_v3 = vadd.f32 %v1003_v16, %v1002_v32  ;;  %v1017_v18 = vrot.slane %v1016_v9, 2  ;;  %v2473_v16 = vld [vmem:[#allocation18_spill] sm:$0xff] }
  0xfe   : > { %v1434_v4 = vpop.eup %1433  ;;  %v1039_v46 = vrot.slane %v1038_v35, 2  ;;  %v1052_v24 = vadd.f32 %v1051_v55, %v1050_v27  ;;  %v998_v6 = vrot.slane %v997_v15, 1  ;;  %v1011_v52 = vadd.f32 %v1010_v14, %v1009_v53 }
  0xff   : > { %v1436_v12 = vpop.eup %1435  ;;  %v1033_v44 = vadd.f32 %v1032_v23, %v1031_v54  ;;  %v1046_v58 = vrot.slane %v1045_v2, 2  ;;  %v1005_v33 = vrot.slane %v1004_v3, 1  ;;  %v1018_v26 = vadd.f32 %v1017_v18, %v1016_v9 }
 0x100   : > { %v1438_v47 = vpop.eup %1437  ;;  %v1040_v37 = vadd.f32 %v1039_v46, %v1038_v35  ;;  %v1053_v62 = vrot.slane %v1052_v24, 2  ;;  %v845_v60 = vadd.f32 %v844_v13, %v2294_v5  ;;  %v999_v21 = vadd.f32 %v998_v6, %v997_v15 }
 0x101   : > { %v1012_v25 = vrot.slane %v1011_v52, 1  ;;  %v1047_v43 = vadd.f32 %v1046_v58, %v1045_v2  ;;  %v1006_v42 = vadd.f32 %v1005_v33, %v1004_v3  ;;  %v1019_v19 = vrot.slane %v1018_v26, 1 }
 0x102   : > { %v1034_v48 = vrot.slane %v1033_v44, 1  ;;  %v1054_v51 = vadd.f32 %v1053_v62, %v1052_v24  ;;  %v852_v0 = vadd.f32 %v851_v31, %v2297_v28  ;;  %v1041_v49 = vrot.slane %v1040_v37, 1 }
 0x103   : > { %v1013_v57 = vadd.f32 %v1012_v25, %v1011_v52  ;;  %1439 = vrcp.f32 %v999_v21  ;;  %v854_v59 = vmul.f32 %v2303_v61, %v2314_v22  ;;  %v1020_v40 = vadd.f32 %v1019_v19, %v1018_v26 }
 0x104   : > { %v1048_v5 = vrot.slane %v1047_v43, 1  ;;  %1441 = vrcp.f32 %v1006_v42  ;;  %v659_v13 = vmul.f32 %v1426_v36, %v2300_v17  ;;  %v855_v29 = vmul.f32 %v2303_v61, %v2318_v56 }
 0x105   : > { %v1055_v7 = vrot.slane %v1054_v51, 1  ;;  %1443 = vrcp.f32 %v1013_v57  ;;  %v660_v20 = vmul.f32 %v1428_v8, %v2306_v11  ;;  %v856_v28 = vmul.f32 %v2303_v61, %v845_v60  ;;  %v2472_v8 = vld [vmem:[#allocation17_spill] sm:$0xff] }
 0x106   : > { %v1035_v31 = vadd.f32 %v1034_v48, %v1033_v44  ;;  %1445 = vrcp.f32 %v1020_v40  ;;  %v661_v41 = vmul.f32 %v1430_v34, %v2309_v39  ;;  %v857_v22 = vmul.f32 %v2303_v61, %v852_v0 }
 0x107   : > { %v1042_v32 = vadd.f32 %v1041_v49, %v1040_v37  ;;  %v1057_v10 = vstv %s2328_s4  ;;  %v662_v17 = vadd.f32 %v2312_v38, %v2198_v50  ;;  %v862_v36 = vmul.f32 %v1432_v1, %v854_v59 }
 0x108   : > { %v1049_v56 = vadd.f32 %v1048_v5, %v1047_v43  ;;  %v663_v27 = vadd.f32 %v659_v13, %v2471_v63  ;;  %v863_v45 = vmul.f32 %v1434_v4, %v855_v29  ;;  %v1056_v11 = vadd.f32 %v1055_v7, %v1054_v51  ;;  %v2474_v13 = vld [vmem:[#allocation11_spill] sm:$0xff] }
 0x109   : > { %v664_v53 = vadd.f32 %v660_v20, %v2472_v8  ;;  %v864_v54 = vmul.f32 %v1436_v12, %v856_v28  ;;  %v1058_v30 = vmul.f32 %v1057_v10, %v1035_v31  ;;  %v665_v39 = vadd.f32 %v661_v41, %v2473_v16 }
 0x10a   : > { %v865_v34 = vmul.f32 %v1438_v47, %v857_v22  ;;  %v1059_v61 = vmul.f32 %v1057_v10, %v1042_v32  ;;  %v866_v9 = vadd.f32 %v862_v36, %v662_v17  ;;  %v1060_v35 = vmul.f32 %v1057_v10, %v1049_v56  ;;  %v1471_v56 = vld [vmem:[%s1778_s6] sm:$0xf]  ;;  %s1521_s6 = sshll.u32 %s1594_s11, 4  ;;  %s1522_s6 = int_to_ptr.vmem [resolvable:$false] %s1521_s6 }
 0x10b   : > { %v867_v15 = vadd.f32 %v863_v45, %v663_v27  ;;  %v1061_v14 = vmul.f32 %v1057_v10, %v1056_v11  ;;  %v868_v38 = vadd.f32 %v864_v54, %v664_v53  ;;  %v1075_v3 = vstv %s1279_s8  ;;  %s1523_s23 = scalar_lea.vmem %s1522_s6, 128  ;;  %p1524_p1 = scmp.lt.s32.totalorder %s2361_s19, %s1522_s6 }
 0x10c   : > { %v869_v2 = vadd.f32 %v865_v34, %v665_v39  ;;  %v1593_v49 = vmov 1966171168   ;;  %v2475_v36 = vlaneseq  ;;  %p1525_p4 = scmp.lt.s32.totalorder %s1523_s23, %s1517_s16 }
 0x10d   : > { %v1440_v55 = vpop.eup %1439  ;;  %v1111_v59 = vunpack.c.l.s4 %v1593_v49 }
 0x10e   : > { %v1442_v50 = vpop.eup %1441  ;;  %v1066_v1 = vmul.f32 %v1440_v55, %v1058_v30  ;;  %vm1136_vm0 = vcmp.lt.s32.totalorder %v2475_v36, 512  ;;  %p1526_p11 = por %p1525_p4, %p1524_p1 }
 0x10f   : > { %v1444_v23 = vpop.eup %1443  ;;  %v1067_v4 = vmul.f32 %v1442_v50, %v1059_v61  ;;  %v1112_v40 = vunpack.c.0.s8 %v1111_v59 }
 0x110   : > { %v1446_v18 = vpop.eup %1445  ;;  %v1068_v46 = vmul.f32 %v1444_v23, %v1060_v35  ;;  %v1070_v24 = vadd.f32 %v1066_v1, %v866_v9  ;;  %p1527_p0 = pnand %p1526_p11, %p1520_p10 }
 0x111   : > { %v1069_v12 = vmul.f32 %v1446_v18, %v1061_v14  ;;  %v1071_v6 = vadd.f32 %v1067_v4, %v867_v15  ;;  %v1115_v29 = vsub.s32 %v1112_v40, %v2474_v13 }
 0x112   : > { %v1072_v52 = vadd.f32 %v1068_v46, %v868_v38  ;;  %v1076_v44 = vadd.f32 %v1075_v3, %v1070_v24 }
 0x113   : > { %v1073_v58 = vadd.f32 %v1069_v12, %v869_v2  ;;  %v1077_v47 = vadd.f32 %v1075_v3, %v1071_v6 }
 0x114   : > { %v1078_v33 = vadd.f32 %v1075_v3, %v1072_v52  ;;  %v1280_v26 = vmul.f32 -1.442695, %v1076_v44 }
 0x115   : > { %v1079_v37 = vadd.f32 %v1075_v3, %v1073_v58  ;;  %v1281_v62 = vmul.f32 -1.442695, %v1077_v47 }
 0x116   : > { %1447 = vpow2.f32 %v1280_v26  ;;  %v1282_v60 = vmul.f32 -1.442695, %v1078_v33 }
 0x117   : > { %1449 = vpow2.f32 %v1281_v62  ;;  %v1283_v21 = vmul.f32 -1.442695, %v1079_v37 }
 0x118   : > { %1451 = vpow2.f32 %v1282_v60 }
 0x119   : > { %1453 = vpow2.f32 %v1283_v21 }
 0x120   : > { %v1448_v25 = vpop.eup %1447 }
 0x121   : > { %v1450_v43 = vpop.eup %1449  ;;  %v1092_v42 = vadd.f32 1.0, %v1448_v25 }
 0x122   : > { %v1452_v19 = vpop.eup %1451  ;;  %v1093_v48 = vadd.f32 1.0, %v1450_v43 }
 0x123   : > { %v1454_v51 = vpop.eup %1453  ;;  %v1094_v0 = vadd.f32 1.0, %v1452_v19  ;;  %1455 = vrcp.f32 %v1092_v42 }
 0x124   : > { %v1095_v57 = vadd.f32 1.0, %v1454_v51  ;;  %1457 = vrcp.f32 %v1093_v48 }
 0x125   : > { %1459 = vrcp.f32 %v1094_v0 }
 0x126   : > { %1461 = vrcp.f32 %v1095_v57 }
 0x12d   : > { %v1456_v5 = vpop.eup %1455 }
 0x12e   : > { %v1458_v7 = vpop.eup %1457 }
 0x12f   : > { %v1460_v20 = vpop.eup %1459  ;;  %v1108_v28 = vcombine.low %v1456_v5, %v1458_v7 }
 0x130   : > { %v1462_v31 = vpop.eup %1461 }
 0x131   : > { %v1109_v41 = vcombine.low %v1460_v20, %v1462_v31  ;;  %v1116_v22 = vrot.slane %v1108_v28, %v1115_v29 }
 0x133   : > { %v1123_v32 = vrot.slane %v1109_v41, %v1115_v29 }
 0x135   : > { %v1124_v10 = vcombine.low %v1116_v22, %v1123_v32 }
 0x137   : > { %v1131_v17 = vrot.slane %v1124_v10, %v1115_v29 }
 0x139   : > { %v1133_v63 = vmul.f32 %v1471_v56, %v1131_v17 }
 0x13b   : > { %1138 = vst.msk [vmem:[%s215_s17] sm:$0xf] %vm1136_vm0, %v1133_v63 }
 0x13c   : > { %1530 = shalt.err (!%p1527_p0)
}
 0x13d   : > { %s1531_s27 = scalar_lea.hbm %s2359_s26, 64  ;;  %s1535_s7 = scalar_lea.hbm %s2406_s3, 128 }
 0x13e   : > { %p1532_p2 = scmp.ne.s32.totalorder %s2359_s26, %s1531_s27  ;;  %p1536_p12 = scmp.lt.u32.totalorder %s2359_s26, %s2406_s3 }
 0x13f   : > { %p1537_p6 = scmp.lt.u32.totalorder %s1535_s7, %s1531_s27  ;;  %p1539_p3 = scmp.lt.u32.totalorder %s1531_s27, %s2359_s26 }
 0x140   : > { %p1533_p7 = pnand %p1532_p2, %p2476_p8 }
 0x141   : > { %p1538_p13 = por %p1537_p6, %p1536_p12 }
 0x142   : > { %p1534_p5 = pneg %p1533_p7 }
 0x143   : > { %p1540_p9 = por %p1539_p3, %p1538_p13 }
 0x145   : > { %p1541_p10 = pnand %p1540_p9, %p1534_p5 }
 0x147   : > { %1544 = shalt.err (!%p1541_p10)
}
 0x148   : > { %1297 = dma.vmem_to_hbm [thread:$0]  (%p2476_p8), %s2361_s19, 64, %s2359_s26, %s1140_s5  }
 0x149 PF: > { %s1166_s8 = sand.u32 1, %s1575_s12   ;;  %p2477_p1 = scmp.ne.s32.totalorder %s2427_s25, 0 }
 0x14a   : > { %p2478_p4 = scmp.ge.s32.totalorder %s1587_s15, 2  ;;  %s1167_s9 = scalar_lea.sflag [#allocation4], %s1166_s8 }
 0x14c   : > { %p1308_p11 = pnand %p2478_p4, %p2477_p1 }
 0x14e   : > { %1570 = dma.done.wait (!%p1308_p11), %s1167_s9, 64  }
 0x14f   : > { %1572 = vsyncadd (!%p1308_p11), %s1167_s9, 4294967232  ;;  %p17_p0 = scmp.ge.s32.totalorder %s1640_s18, 4   ;;  %s2479_s12 = smov %s1579_s13 }
 0x150   : > { %s2480_s13 = smov %s1583_s14  ;;  %s2481_s14 = smov %s1652_s21 }
 0x151   : > { %s2482_s15 = smov %s1640_s18  ;;  %19 = sbr.rel (!%p17_p0) target bundleno = 6 (0x6), region = 85 }
 0x158   :  { %1172 = vsyncpa [#allocation3], 1 }
 0x159   :  { %1174 = vsyncpa [#allocation3 + $0x1], 1 }
 0x15a   :  { %1175 = vsyncpa [#allocation4], 1 }
 0x15b   :  { %1177 = vsyncpa [#allocation4 + $0x1], 1 }
 0x15c   :  { %1178 = vsyncpa [#allocation5], 1 }
 0x15d   :  { %1180 = vsyncpa [#allocation5 + $0x1], 1 }

</bundles_post_ra>
